<compile_context>
chip_gen: v7x
topology: tpu7x:2x2x1
jax: 0.10.0
libtpu: 0.0.40
codegen_flags: <defaults>
</compile_context>

<pallas_src>
import jax
import jax.numpy as jnp
from jax.experimental import pallas as pl
from jax.experimental.pallas import tpu as pltpu


def _round_up(v, m):
    return (v + m - 1) // m * m


def _highway_kernel(x_ref, w_ref, b_ref, o_ref, cur_ref=None):
    """One grid step == (one batch tile, one highway layer).

    x_ref:   (TN, D)     input tile (read at layer 0; resident across layers)
    w_ref:   (L, D, 2D)  all layers' transposed weights (resident), or
             (1, D, 2D)  streamed per-layer weight (large-weight fallback)
    b_ref:   matching bias block, f32
    o_ref:   (TN, D)     output tile; doubles as the f32 layer carry when the
                         output dtype is f32 (cur_ref is None)
    cur_ref: (TN, D) f32 optional scratch carry for non-f32 outputs
    """
    layer = pl.program_id(1)
    carry = o_ref if cur_ref is None else cur_ref

    @pl.when(layer == 0)
    def _():
        carry[...] = x_ref[...].astype(carry.dtype)

    x = carry[...].astype(jnp.float32)            # (TN, D) f32 carry
    d = x.shape[-1]
    wi = layer if w_ref.shape[0] > 1 else 0       # resident: index layer l

    # projected = x @ W^T + b  -> (TN, 2D); low-precision operands on the MXU,
    # f32 accumulation; all post-matmul elementwise math stays f32.
    proj = jnp.dot(x.astype(w_ref.dtype), w_ref[wi],
                   preferred_element_type=jnp.float32) + b_ref[wi]

    nonlinear = jnp.maximum(proj[:, :d], 0.0)     # ReLU(first half)
    # sigmoid(z) == 0.5*(tanh(z/2)+1): one EUP transcendental per element.
    gate = 0.5 * (jnp.tanh(0.5 * proj[:, d:]) + 1.0)

    # gate*x + (1-gate)*nl  ==  nl + gate*(x - nl)   (one fewer VALU multiply)
    carry[...] = (nonlinear + gate * (x - nonlinear)).astype(carry.dtype)

    if cur_ref is not None:
        @pl.when(layer == pl.num_programs(1) - 1)
        def _():
            o_ref[...] = cur_ref[...].astype(o_ref.dtype)


def _scoped_vmem_budget_bytes():
    """Generation-aware scoped-VMEM budget: ~3/4 of physical, capped ~100 MiB.

    128 MiB parts (v5e/v6e) -> ~96 MiB; 64 MiB parts (v7x) -> 48 MiB.
    Falls back to a conservative 48 MiB budget if the query is unavailable.
    """
    try:
        phys = int(pltpu.get_tpu_info().vmem_capacity_bytes)
    except Exception:
        phys = 64 * 2**20
    return int(min(100 * 2**20, (phys * 3) // 4))


def highway_forward(x, weights_t, biases, *, max_tile_n=4096,
                    matmul_dtype=jnp.bfloat16):
    """Highway forward pass.

    x:         (N, D)
    weights_t: (L, D, 2D)  transposed torch.nn.Linear weights (so x @ W^T)
    biases:    (L, 1, 2D)
    matmul_dtype: MXU operand dtype (bf16 default; pass jnp.float32 for
                  full f32 parity with the PyTorch forward).
    """
    N, D = x.shape
    L = weights_t.shape[0]
    assert weights_t.shape == (L, D, 2 * D)
    assert biases.shape == (L, 1, 2 * D)
    assert D % 128 == 0, "input_dim must be a multiple of 128 (lane-aligned)"
    # TODO(synk): pad the feature dim for non-128-aligned input_dim.

    w = weights_t.astype(matmul_dtype)
    b = biases.astype(jnp.float32)
    xb = x.dtype.itemsize
    wb = w.dtype.itemsize

    vmem_budget = _scoped_vmem_budget_bytes()

    # Resident weights: one (L, D, 2D) block with a constant index_map.
    # Budget conservatively for 2 buffers in case Buffered(1) is unavailable.
    w_resident_bytes = 2 * (L * D * 2 * D * wb + L * 2 * D * 4)
    w_streamed_bytes = 2 * (D * 2 * D * wb + 2 * D * 4)
    weights_resident = w_resident_bytes <= vmem_budget // 2

    # Per-row VMEM cost, including kernel-internal intermediates.
    out_is_carry = (x.dtype == jnp.float32)
    per_row = (2 * D * xb                        # x tile, double-buffered
               + 2 * D * xb                      # output tile, double-buffered
               + 2 * D * 4                       # (TN, 2D) f32 projection
               + D * wb                          # low-precision carry cast
               + 2 * D * 4                       # relu/gate/blend temporaries
               + (0 if out_is_carry else D * 4))  # scratch carry (non-f32 out)
    fixed = w_resident_bytes if weights_resident else w_streamed_bytes
    usable = max(vmem_budget - fixed - 2 * 2**20, 2 * 2**20)
    tile_n = max(128, min(max_tile_n, (usable * 4 // 5) // per_row))
    tile_n = _round_up(tile_n, 8)

    # Clamp to the batch; no wrapper-side padding (Pallas masks partial tiles).
    tile_n = min(tile_n, _round_up(N, 8))
    n_tiles = -(-N // tile_n)
    # Prefer an even (>=2) number of batch tiles so both v7x TensorCores get
    # work, as long as tiles stay reasonably large.
    if n_tiles % 2 == 1 and N >= 512:
        tile_n = _round_up(-(-N // (n_tiles + 1)), 8)
        n_tiles = -(-N // tile_n)

    work_bytes = per_row * tile_n + fixed
    vmem_limit = int(min(vmem_budget, max(2 * work_bytes, 16 * 2**20)))

    weight_reads = 1 if weights_resident else n_tiles
    cost = pl.CostEstimate(
        flops=2 * N * D * (2 * D) * L,
        transcendentals=N * D * L,               # one tanh per gate element
        bytes_accessed=(x.size * xb + N * D * xb
                        + weight_reads * (w.size * wb + b.size * 4)),
    )

    out_shape = jax.ShapeDtypeStruct((N, D), x.dtype)
    scratch = [] if out_is_carry else [pltpu.VMEM((tile_n, D), jnp.float32)]

    if weights_resident:
        wb_shape, bb_shape = (L, D, 2 * D), (L, 1, 2 * D)
        w_imap = lambda n, l: (0, 0, 0)          # resident across all steps
    else:
        wb_shape, bb_shape = (1, D, 2 * D), (1, 1, 2 * D)
        w_imap = lambda n, l: (l, 0, 0)          # stream per-layer weights

    def build_call(single_buffer_weights):
        extra = {}
        if single_buffer_weights:
            # Constant-index resident block: a second buffer is pure waste
            # (matters most on v7x's 64 MiB VMEM).
            extra = dict(pipeline_mode=pl.Buffered(1))
        w_spec = pl.BlockSpec(wb_shape, w_imap, **extra)
        b_spec = pl.BlockSpec(bb_shape, w_imap, **extra)
        return pl.pallas_call(
            _highway_kernel,
            out_shape=out_shape,
            grid_spec=pltpu.PrefetchScalarGridSpec(
                num_scalar_prefetch=0,
                grid=(n_tiles, L),               # batch tiles outer, layers inner
                in_specs=[
                    pl.BlockSpec((tile_n, D), lambda n, l: (n, 0)),   # x tile
                    w_spec,                                           # W^T
                    b_spec,                                           # bias
                ],
                out_specs=pl.BlockSpec((tile_n, D), lambda n, l: (n, 0)),
                scratch_shapes=scratch,
            ),
            compiler_params=pltpu.CompilerParams(
                # Batch tiles independent (megacore / dual-TC sharding);
                # the layer axis carries state and must stay sequential.
                # TODO(synk): evaluate pltpu.CORE_PARALLEL for the batch axis
                # on v7x vs plain "parallel" once measured.
                dimension_semantics=("parallel", "arbitrary"),
                vmem_limit_bytes=vmem_limit,
            ),
            cost_estimate=cost,
        )

    if weights_resident:
        try:
            return build_call(True)(x, w, b)
        except Exception:
            # Runtime without single-buffer pipeline_mode support: fall back
            # to default (double-buffered) resident weights.
            return build_call(False)(x, w, b)
    return build_call(False)(x, w, b)


def highway_reference(x, weights_t, biases, matmul_dtype=jnp.float32):
    """Pure-JAX reference mirroring the PyTorch forward pass.

    matmul_dtype lets the reference mirror the kernel's bf16-operand /
    f32-accumulate matmul for a tight correctness check.
    """
    cur = x.astype(jnp.float32)
    D = x.shape[-1]
    for l in range(weights_t.shape[0]):
        proj = jnp.dot(cur.astype(matmul_dtype),
                       weights_t[l].astype(matmul_dtype),
                       preferred_element_type=jnp.float32) + biases[l, 0]
        nonlinear = jnp.maximum(proj[:, :D], 0.0)
        gate = jax.nn.sigmoid(proj[:, D:])
        cur = nonlinear + gate * (cur - nonlinear)   # == gate*x + (1-gate)*nl
    return cur.astype(x.dtype)


if __name__ == "__main__":
    # Small shapes consistent with the module: Linear(input_dim, 2*input_dim).
    # D must be lane-aligned (multiple of 128); N=512 exercises two batch
    # tiles (the "parallel" axis). For tiny real batches, fold other leading
    # dims (e.g. sequence) into N before calling.
    N = 512          # batch
    D = 128          # input_dim
    L = 2            # n_highway

    key = jax.random.PRNGKey(0)
    kx, kw = jax.random.split(key)

    x = jax.random.normal(kx, (N, D), dtype=jnp.float32)

    # Deterministic synthetic parameters matching __init__ shapes:
    #   torch.nn.Linear(D, 2D): weight (2D, D), bias (2D,), bias[D:] = 1.
    # Stored here as W^T with shape (L, D, 2D).
    weights_t = 0.05 * jax.random.normal(kw, (L, D, 2 * D), dtype=jnp.float32)
    bias = jnp.zeros((L, 2 * D), dtype=jnp.float32).at[:, D:].set(1.0)
    biases = bias.reshape(L, 1, 2 * D)

    out = highway_forward(x, weights_t, biases)
    jax.block_until_ready(out)
    assert out.shape == (N, D)

    # Tight check vs. a reference that mirrors the kernel's bf16-operand matmul.
    ref_bf16 = highway_reference(x, weights_t, biases, matmul_dtype=jnp.bfloat16)
    assert jnp.allclose(out, ref_bf16, atol=2e-3, rtol=2e-3), "mismatch (bf16 ref)"
    # Looser check vs. the full-f32 PyTorch-parity reference.
    ref_f32 = highway_reference(x, weights_t, biases, matmul_dtype=jnp.float32)
    assert jnp.allclose(out, ref_f32, atol=3e-2, rtol=3e-2), "mismatch (f32 ref)"

    print("KERNEL_OK")
</pallas_src>

<mosaic_0001>
module attributes {stable_mosaic.version = 11 : i64} {
  func.func @_highway_kernel(%arg0: i32, %arg1: i32, %arg2: memref<256x128xf32, #tpu.memory_space<vmem>>, %arg3: memref<2x128x256xbf16, #tpu.memory_space<vmem>>, %arg4: memref<2x1x256xf32, #tpu.memory_space<vmem>>, %arg5: memref<256x128xf32, #tpu.memory_space<vmem>>) attributes {dimension_semantics = [#tpu.dimension_semantics<parallel>, #tpu.dimension_semantics<arbitrary>], iteration_bounds = array<i64: 2, 2>, scalar_prefetch = 0 : i64, scratch_operands = 0 : i64, tpu.core_type = #tpu.core_type<tc>, window_params = [{transform_indices = @transform_0, window_bounds = array<i64: 256, 128>}, {pipeline_mode = #tpu.pipeline_mode<synchronous>, transform_indices = @transform_1, window_bounds = array<i64: 2, 128, 256>}, {pipeline_mode = #tpu.pipeline_mode<synchronous>, transform_indices = @transform_2, window_bounds = array<i64: 2, 1, 256>}, {transform_indices = @transform_3, window_bounds = array<i64: 256, 128>}]} {
    %c0_i32 = arith.constant 0 : i32
    %0 = arith.cmpi eq, %arg1, %c0_i32 : i32
    %1 = arith.extui %0 : i1 to i32
    %c0_i32_0 = arith.constant 0 : i32
    %2 = arith.cmpi ne, %1, %c0_i32_0 : i32
    scf.if %2 {
      %c0_12 = arith.constant 0 : index
      %c0_13 = arith.constant 0 : index
      %29 = vector.load %arg2[%c0_12, %c0_13] : memref<256x128xf32, #tpu.memory_space<vmem>>, vector<256x128xf32>
      %c0_14 = arith.constant 0 : index
      %c0_15 = arith.constant 0 : index
      %30 = vector.load %arg5[%c0_14, %c0_15] : memref<256x128xf32, #tpu.memory_space<vmem>>, vector<256x128xf32>
      tpu.vector_store %arg5[%c0_14, %c0_15], %29 {strides = array<i32>} : memref<256x128xf32, #tpu.memory_space<vmem>>, vector<256x128xf32>,
    } else {
    }
    %c0 = arith.constant 0 : index
    %c0_1 = arith.constant 0 : index
    %3 = vector.load %arg5[%c0, %c0_1] : memref<256x128xf32, #tpu.memory_space<vmem>>, vector<256x128xf32>
    %4 = arith.truncf %3 : vector<256x128xf32> to vector<256x128xbf16>
    %5 = arith.index_cast %arg1 : i32 to index
    %c0_2 = arith.constant 0 : index
    %c0_3 = arith.constant 0 : index
    %6 = vector.load %arg3[%5, %c0_2, %c0_3] : memref<2x128x256xbf16, #tpu.memory_space<vmem>>, vector<1x128x256xbf16>
    %7 = vector.shape_cast %6 : vector<1x128x256xbf16> to vector<128x256xbf16>
    %cst = arith.constant dense<0.000000e+00> : vector<256x256xf32>
    %8 = tpu.matmul %4, %7, %cst {dimension_numbers = #tpu.dot_dimension_numbers<[1], [0], [0], [1], [0, 0, 1, 1], [], []>} : vector<256x128xbf16>, vector<128x256xbf16>, vector<256x256xf32> -> vector<256x256xf32>
    %9 = arith.index_cast %arg1 : i32 to index
    %c0_4 = arith.constant 0 : index
    %c0_5 = arith.constant 0 : index
    %10 = vector.load %arg4[%9, %c0_4, %c0_5] : memref<2x1x256xf32, #tpu.memory_space<vmem>>, vector<1x1x256xf32>
    %11 = vector.shape_cast %10 : vector<1x1x256xf32> to vector<1x256xf32>
    %12 = vector.broadcast %11 : vector<1x256xf32> to vector<256x256xf32>
    %13 = arith.addf %8, %12 : vector<256x256xf32>
    %14 = vector.extract_strided_slice %13 {offsets = [0, 0], sizes = [256, 128], strides = [1, 1]} : vector<256x256xf32> to vector<256x128xf32>
    %cst_6 = arith.constant 0.000000e+00 : f32
    %15 = vector.broadcast %cst_6 : f32 to vector<256x128xf32>
    %16 = arith.maximumf %14, %15 : vector<256x128xf32>
    %17 = vector.extract_strided_slice %13 {offsets = [0, 128], sizes = [256, 128], strides = [1, 1]} : vector<256x256xf32> to vector<256x128xf32>
    %cst_7 = arith.constant 5.000000e-01 : f32
    %18 = vector.broadcast %cst_7 : f32 to vector<256x128xf32>
    %19 = arith.mulf %18, %17 : vector<256x128xf32>
    %20 = math.tanh %19 : vector<256x128xf32>
    %cst_8 = arith.constant 1.000000e+00 : f32
    %21 = vector.broadcast %cst_8 : f32 to vector<256x128xf32>
    %22 = arith.addf %20, %21 : vector<256x128xf32>
    %cst_9 = arith.constant 5.000000e-01 : f32
    %23 = vector.broadcast %cst_9 : f32 to vector<256x128xf32>
    %24 = arith.mulf %23, %22 : vector<256x128xf32>
    %25 = arith.subf %3, %16 : vector<256x128xf32>
    %26 = arith.mulf %24, %25 : vector<256x128xf32>
    %27 = arith.addf %16, %26 : vector<256x128xf32>
    %c0_10 = arith.constant 0 : index
    %c0_11 = arith.constant 0 : index
    %28 = vector.load %arg5[%c0_10, %c0_11] : memref<256x128xf32, #tpu.memory_space<vmem>>, vector<256x128xf32>
    tpu.vector_store %arg5[%c0_10, %c0_11], %27 {strides = array<i32>} : memref<256x128xf32, #tpu.memory_space<vmem>>, vector<256x128xf32>,
    return
  }
  func.func @transform_0(%arg0: i32, %arg1: i32) -> (i32, i32) {
    %c0_i32 = arith.constant 0 : i32
    %c0_i32_0 = arith.constant 0 : i32
    return %arg0, %c0_i32 : i32, i32
  }
  func.func @transform_1(%arg0: i32, %arg1: i32) -> (i32, i32, i32) {
    %c0_i32 = arith.constant 0 : i32
    %c0_i32_0 = arith.constant 0 : i32
    %c0_i32_1 = arith.constant 0 : i32
    %c0_i32_2 = arith.constant 0 : i32
    return %c0_i32, %c0_i32_0, %c0_i32_1 : i32, i32, i32
  }
  func.func @transform_2(%arg0: i32, %arg1: i32) -> (i32, i32, i32) {
    %c0_i32 = arith.constant 0 : i32
    %c0_i32_0 = arith.constant 0 : i32
    %c0_i32_1 = arith.constant 0 : i32
    %c0_i32_2 = arith.constant 0 : i32
    return %c0_i32, %c0_i32_0, %c0_i32_1 : i32, i32, i32
  }
  func.func @transform_3(%arg0: i32, %arg1: i32) -> (i32, i32) {
    %c0_i32 = arith.constant 0 : i32
    %c0_i32_0 = arith.constant 0 : i32
    return %arg0, %c0_i32 : i32, i32
  }
}

module attributes {stable_mosaic.version = 11 : i64} {
  func.func @_highway_kernel(%arg0: i32, %arg1: i32, %arg2: memref<256x128xf32, #tpu.memory_space<vmem>>, %arg3: memref<2x128x256xbf16, #tpu.memory_space<vmem>>, %arg4: memref<2x1x256xf32, #tpu.memory_space<vmem>>, %arg5: memref<256x128xf32, #tpu.memory_space<vmem>>) attributes {dimension_semantics = [#tpu.dimension_semantics<parallel>, #tpu.dimension_semantics<arbitrary>], iteration_bounds = array<i64: 2, 2>, scalar_prefetch = 0 : i64, scratch_operands = 0 : i64, tpu.core_type = #tpu.core_type<tc>, window_params = [{transform_indices = @transform_0, window_bounds = array<i64: 256, 128>}, {pipeline_mode = #tpu.pipeline_mode<synchronous>, transform_indices = @transform_1, window_bounds = array<i64: 2, 128, 256>}, {pipeline_mode = #tpu.pipeline_mode<synchronous>, transform_indices = @transform_2, window_bounds = array<i64: 2, 1, 256>}, {transform_indices = @transform_3, window_bounds = array<i64: 256, 128>}]} {
    %c0_i32 = arith.constant 0 : i32
    %0 = arith.cmpi eq, %arg1, %c0_i32 : i32
    %1 = arith.extui %0 : i1 to i32
    %c0_i32_0 = arith.constant 0 : i32
    %2 = arith.cmpi ne, %1, %c0_i32_0 : i32
    scf.if %2 {
      %c0_12 = arith.constant 0 : index
      %c0_13 = arith.constant 0 : index
      %29 = vector.load %arg2[%c0_12, %c0_13] : memref<256x128xf32, #tpu.memory_space<vmem>>, vector<256x128xf32>
      %c0_14 = arith.constant 0 : index
      %c0_15 = arith.constant 0 : index
      %30 = vector.load %arg5[%c0_14, %c0_15] : memref<256x128xf32, #tpu.memory_space<vmem>>, vector<256x128xf32>
      tpu.vector_store %arg5[%c0_14, %c0_15], %29 {strides = array<i32>} : memref<256x128xf32, #tpu.memory_space<vmem>>, vector<256x128xf32>,
    } else {
    }
    %c0 = arith.constant 0 : index
    %c0_1 = arith.constant 0 : index
    %3 = vector.load %arg5[%c0, %c0_1] : memref<256x128xf32, #tpu.memory_space<vmem>>, vector<256x128xf32>
    %4 = arith.truncf %3 : vector<256x128xf32> to vector<256x128xbf16>
    %5 = arith.index_cast %arg1 : i32 to index
    %c0_2 = arith.constant 0 : index
    %c0_3 = arith.constant 0 : index
    %6 = vector.load %arg3[%5, %c0_2, %c0_3] : memref<2x128x256xbf16, #tpu.memory_space<vmem>>, vector<1x128x256xbf16>
    %7 = vector.shape_cast %6 : vector<1x128x256xbf16> to vector<128x256xbf16>
    %cst = arith.constant dense<0.000000e+00> : vector<256x256xf32>
    %8 = tpu.matmul %4, %7, %cst {dimension_numbers = #tpu.dot_dimension_numbers<[1], [0], [0], [1], [0, 0, 1, 1], [], []>} : vector<256x128xbf16>, vector<128x256xbf16>, vector<256x256xf32> -> vector<256x256xf32>
    %9 = arith.index_cast %arg1 : i32 to index
    %c0_4 = arith.constant 0 : index
    %c0_5 = arith.constant 0 : index
    %10 = vector.load %arg4[%9, %c0_4, %c0_5] : memref<2x1x256xf32, #tpu.memory_space<vmem>>, vector<1x1x256xf32>
    %11 = vector.shape_cast %10 : vector<1x1x256xf32> to vector<1x256xf32>
    %12 = vector.broadcast %11 : vector<1x256xf32> to vector<256x256xf32>
    %13 = arith.addf %8, %12 : vector<256x256xf32>
    %14 = vector.extract_strided_slice %13 {offsets = [0, 0], sizes = [256, 128], strides = [1, 1]} : vector<256x256xf32> to vector<256x128xf32>
    %cst_6 = arith.constant 0.000000e+00 : f32
    %15 = vector.broadcast %cst_6 : f32 to vector<256x128xf32>
    %16 = arith.maximumf %14, %15 : vector<256x128xf32>
    %17 = vector.extract_strided_slice %13 {offsets = [0, 128], sizes = [256, 128], strides = [1, 1]} : vector<256x256xf32> to vector<256x128xf32>
    %cst_7 = arith.constant 5.000000e-01 : f32
    %18 = vector.broadcast %cst_7 : f32 to vector<256x128xf32>
    %19 = arith.mulf %18, %17 : vector<256x128xf32>
    %20 = math.tanh %19 : vector<256x128xf32>
    %cst_8 = arith.constant 1.000000e+00 : f32
    %21 = vector.broadcast %cst_8 : f32 to vector<256x128xf32>
    %22 = arith.addf %20, %21 : vector<256x128xf32>
    %cst_9 = arith.constant 5.000000e-01 : f32
    %23 = vector.broadcast %cst_9 : f32 to vector<256x128xf32>
    %24 = arith.mulf %23, %22 : vector<256x128xf32>
    %25 = arith.subf %3, %16 : vector<256x128xf32>
    %26 = arith.mulf %24, %25 : vector<256x128xf32>
    %27 = arith.addf %16, %26 : vector<256x128xf32>
    %c0_10 = arith.constant 0 : index
    %c0_11 = arith.constant 0 : index
    %28 = vector.load %arg5[%c0_10, %c0_11] : memref<256x128xf32, #tpu.memory_space<vmem>>, vector<256x128xf32>
    tpu.vector_store %arg5[%c0_10, %c0_11], %27 {strides = array<i32>} : memref<256x128xf32, #tpu.memory_space<vmem>>, vector<256x128xf32>,
    return
  }
  func.func @transform_0(%arg0: i32, %arg1: i32) -> (i32, i32) {
    %c0_i32 = arith.constant 0 : i32
    %c0_i32_0 = arith.constant 0 : i32
    return %arg0, %c0_i32 : i32, i32
  }
  func.func @transform_1(%arg0: i32, %arg1: i32) -> (i32, i32, i32) {
    %c0_i32 = arith.constant 0 : i32
    %c0_i32_0 = arith.constant 0 : i32
    %c0_i32_1 = arith.constant 0 : i32
    %c0_i32_2 = arith.constant 0 : i32
    return %c0_i32, %c0_i32_0, %c0_i32_1 : i32, i32, i32
  }
  func.func @transform_2(%arg0: i32, %arg1: i32) -> (i32, i32, i32) {
    %c0_i32 = arith.constant 0 : i32
    %c0_i32_0 = arith.constant 0 : i32
    %c0_i32_1 = arith.constant 0 : i32
    %c0_i32_2 = arith.constant 0 : i32
    return %c0_i32, %c0_i32_0, %c0_i32_1 : i32, i32, i32
  }
  func.func @transform_3(%arg0: i32, %arg1: i32) -> (i32, i32) {
    %c0_i32 = arith.constant 0 : i32
    %c0_i32_0 = arith.constant 0 : i32
    return %arg0, %c0_i32 : i32, i32
  }
}

</mosaic_0001>

<bundles_post_ra>
// kernel: tpu_custom_call.1
= control target key start
LH: loop header
LB: loop body
LE: loop exit
PB: predicated region body
PF: predicated region fallthrough
CT: control target
= control target key end

     0   :  { %8 = vsyncpa [#allocation3], 0  ;;  %s2251_s0 = inlined_call_operand.hbm [shape: f32[512,128], index: 0, kind: input, shape index: {}]   ;;  %s2252_s1 = inlined_call_operand.hbm [shape: bf16[2,128,256], index: 1, kind: input, shape index: {}]   ;;  %s2253_s2 = inlined_call_operand.vmem [shape: f32[2,1,256], index: 2, kind: input, shape index: {}]   ;;  %s2254_s3 = inlined_call_operand.hbm [shape: f32[512,128], index: 3, kind: output, shape index: {}]  }
   0x1   :  { %10 = vsyncpa [#allocation3 + $0x1], 0 }
   0x2   :  { %11 = vsyncpa [#allocation6], 0 }
   0x3   :  { %12 = vsyncpa [#allocation4], 0 }
   0x4   :  { %14 = vsyncpa [#allocation4 + $0x1], 0  ;;  %s1469_s12 = smov 0   ;;  %s1471_s13 = smov 0  }
   0x5   :  { %s1473_s14 = smov 0   ;;  %s1475_s15 = smov 0  }
   0x6   :  { %s1477_s16 = smov 0   ;;  %s1479_s17 = smov 0  }
   0x7   :  { %s1481_s18 = smov 0   ;;  %s1483_s19 = smov 0  }
   0x8 LB: > { %s1041_s20 = sadd.s32 4294967295, %s1439_s19   ;;  %s1042_s21 = sadd.s32 4294967294, %s1439_s19   ;;  %s1439_s19 = sphi %s1483_s19, %s20_s19   ;;  %s1435_s18 = sphi %s1481_s18, %s2295_s18   ;;  %s1431_s17 = sphi %s1479_s17, %s2294_s17   ;;  %s1427_s16 = sphi %s1477_s16, %s2293_s16   ;;  %s1423_s15 = sphi %s1475_s15, %s2292_s15   ;;  %s1419_s14 = sphi %s1473_s14, %s2291_s14   ;;  %s1415_s13 = sphi %s1471_s13, %s2290_s13   ;;  %s1411_s12 = sphi %s1469_s12, %s2289_s12  }
   0x9   : > { %p52_p0 = scmp.ne.s32.totalorder %s1415_s13, %s1411_s12  ;;  %p1513_p1 = scmp.eq.s32.totalorder %s1041_s20, 0 }
   0xa   : > { %p1517_p2 = scmp.eq.s32.totalorder %s1041_s20, 3  ;;  %p124_p3 = scmp.eq.s32.totalorder %s1042_s21, 3 }
   0xb   : > { %s2264_s22 = scalar_select %p1513_p1, 1, 0 }
   0xc   : > { %s2265_s23 = scalar_select %p1517_p2, 1, 0 }
   0xd   : > { %p1523_p4 = por %p1513_p1, %p52_p0  ;;  %p1043_p5 = scmp.ge.s32.totalorder %s1439_s19, 1 }
   0xe   : > { %p1528_p6 = por %p124_p3, %p52_p0  ;;  %p131_p7 = scmp.lt.s32.totalorder %s1439_s19, 5 }
   0xf   : > { %s2266_s24 = scalar_select %p1523_p4, 1, 0 }
  0x10   : > { %s2267_s25 = scalar_select %p1528_p6, 1, 0 }
  0x11   : > { %p1533_p8 = pnand %p1043_p5, %p131_p7  ;;  %s1441_s27 = smov [#allocation5]  }
  0x12   : > { %s143_s28 = sshll.u32 %s1441_s27, 4  ;;  %s1279_s5 = scalar_lea.hbm %s2252_s1, 4096  ;;  %s144_s28 = int_to_ptr.vmem [resolvable:$true] %s143_s28 }
  0x13   : > { %s2268_s26 = scalar_select %p1533_p8, 1, 0 }
  0x14   : > { %p1105_p9 = pneg %p1533_p8  ;;  %p1280_p11 = scmp.ne.s32.totalorder %s2252_s1, %s1279_s5 }
  0x15   : > { %p1286_p3 = scmp.lt.u32.totalorder %s1279_s5, %s2252_s1 }
  0x16   : > { %p1541_p10 = pnand %p1105_p9, %p1513_p1 }
  0x18   : > { %p1281_p12 = pneg %p1541_p10 }
  0x1a   : > { %p1282_p13 = pnand %p1281_p12, %p1280_p11 }
  0x1c   : > { %p1283_p0 = pneg %p1282_p13 }
  0x1e   : > { %p1288_p5 = pnand %p1286_p3, %p1283_p0 }
  0x20   : > { %1291 = shalt.err (!%p1288_p5)
}
  0x21   : > { %s1292_s10 = scalar_lea.vmem %s144_s28, 4096  ;;  %p1300_p1 = scmp.lt.s32.totalorder %s144_s28, %s144_s28 }
  0x22   : > { %p1293_p7 = scmp.ne.s32.totalorder %s144_s28, %s1292_s10  ;;  %p1301_p4 = scmp.lt.s32.totalorder %s1292_s10, %s1292_s10 }
  0x24   : > { %p1295_p9 = pnand %p1293_p7, %p1281_p12  ;;  %p1302_p8 = por %p1301_p4, %p1300_p1 }
  0x26   : > { %p1296_p6 = pneg %p1295_p9 }
  0x28   : > { %p1303_p2 = pnand %p1302_p8, %p1296_p6 }
  0x2a   : > { %1306 = shalt.err (!%p1303_p2)
}
  0x2b   : > { %s2259_s11 = smov 128   ;;  %s2260_s20 = smov 8  }
  0x2c   : > { %1108 = dma.hbm_to_vmem [thread:$0]  (!%p1541_p10), %s2252_s1, 4096, %s144_s28, [#allocation6], %s2259_s11, %s2259_s11, %s2260_s20  }
  0x2d   : > { %s29_s30 = sadd.s32 1, %s1431_s17  ;;  %s32_s4 = sadd.s32 1, %s1435_s18 }
  0x2e   : > { %p30_p1 = scmp.ge.s32.totalorder %s29_s30, 2  ;;  %s39_s5 = sadd.s32 1, %s1419_s14 }
  0x2f   : > { %p46_p2 = scmp.ne.s32.totalorder %s1419_s14, %s1415_s13  ;;  %p47_p4 = scmp.eq.s32.totalorder %s1439_s19, 0 }
  0x30   : > { %s2297_s30 = smov (%p30_p1, %s29_s30), 0  ;;  %s2299_s4 = smov (!%p30_p1, %s32_s4), %s1435_s18 }
  0x31   : > { %p2270_p6 = scmp.ne.s32.totalorder %s2265_s23, 0  ;;  %p34_p11 = scmp.ge.s32.totalorder %s2299_s4, 2 }
  0x32   : > { %p1118_p10 = scmp.lt.s32.totalorder %s1439_s19, 4  ;;  %p48_p12 = por %p47_p4, %p46_p2 }
  0x33   : > { %p1575_p8 = por %p2270_p6, %p46_p2  ;;  %s160_s28 = sand.u32 1, %s1419_s14  }
  0x34   : > { %s2301_s4 = smov (%p34_p11, %s2299_s4), 0  ;;  %s1046_s6 = sshll.u32 %s160_s28, 8 }
  0x35   : > { %s36_s7 = ssub.s32 %s1435_s18, %s2301_s4  ;;  %s1078_s8 = sshll.u32 %s1435_s18, 12 }
  0x36   : > { %p37_p13 = scmp.eq.s32.totalorder %s36_s7, 0  ;;  %s1589_s23 = scalar_lea.hbm %s2251_s0, %s1078_s8 }
  0x37   : > { %s164_s21 = scalar_lea.vmem [#allocation2], %s1046_s6  ;;  %p1598_p0 = pnand %p1118_p10, %p48_p12 }
  0x38   : > { %s171_s27 = sshll.u32 %s164_s21, 4  ;;  %s1602_s7 = scalar_lea.sflag [#allocation3], %s160_s28  ;;  %s1594_s27 = int_to_ptr.vmem [resolvable:$true] %s171_s27 }
  0x39   : > { %s1592_s11 = scalar_select %p37_p13, %s1419_s14, %s39_s5  }
  0x3a   : > { %s1307_s8 = scalar_lea.hbm %s1589_s23, 4096  ;;  %p1309_p5 = pneg %p1598_p0 }
  0x3b   : > { %p1308_p3 = scmp.ne.s32.totalorder %s1589_s23, %s1307_s8  ;;  %s1312_s9 = scalar_lea.hbm %s2251_s0, 8192 }
  0x3c   : > { %p1313_p1 = scmp.lt.u32.totalorder %s1589_s23, %s2251_s0  ;;  %p1314_p2 = scmp.lt.u32.totalorder %s1312_s9, %s1307_s8 }
  0x3d   : > { %p1310_p7 = pnand %p1309_p5, %p1308_p3  ;;  %p1316_p6 = scmp.lt.u32.totalorder %s1307_s8, %s1589_s23 }
  0x3e   : > { %p1315_p4 = por %p1314_p2, %p1313_p1 }
  0x3f   : > { %p1311_p9 = pneg %p1310_p7 }
  0x40   : > { %p1317_p11 = por %p1316_p6, %p1315_p4 }
  0x42   : > { %p1318_p10 = pnand %p1317_p11, %p1311_p9 }
  0x44   : > { %1321 = shalt.err (!%p1318_p10)
}
  0x45   : > { %s1322_s28 = scalar_lea.vmem %s1594_s27, 4096  ;;  %s1444_s5 = smov [#allocation2]  }
  0x46   : > { %p1323_p12 = scmp.ne.s32.totalorder %s1594_s27, %s1322_s28  ;;  %s1327_s6 = sshll.u32 %s1444_s5, 4  ;;  %s1328_s6 = int_to_ptr.vmem [resolvable:$false] %s1327_s6 }
  0x47   : > { %s1329_s10 = scalar_lea.vmem %s1328_s6, 8192  ;;  %p1330_p7 = scmp.lt.s32.totalorder %s1594_s27, %s1328_s6 }
  0x48   : > { %p1325_p13 = pnand %p1323_p12, %p1309_p5  ;;  %p1331_p1 = scmp.lt.s32.totalorder %s1329_s10, %s1322_s28 }
  0x4a   : > { %p1326_p3 = pneg %p1325_p13  ;;  %p1332_p2 = por %p1331_p1, %p1330_p7 }
  0x4c   : > { %p1333_p4 = pnand %p1332_p2, %p1326_p3 }
  0x4e   : > { %1336 = shalt.err (!%p1333_p4)
}
  0x4f   : > { %s2273_s8 = smov 8   ;;  %s2274_s9 = smov 128  }
  0x50   : > { %1112 = dma.hbm_to_vmem [thread:$0]  (!%p1598_p0), %s1589_s23, 4096, %s1594_s27, %s1602_s7, %s2274_s9, %s2274_s9, %s2273_s8  }
  0x51   : > { %p2275_p5 = scmp.ne.s32.totalorder %s2268_s26, 0 }
  0x53   : > { %183 = sbr.rel (%p2275_p5) target bundleno = 474 (0x1da), region = 32 }
  0x5a   : > { %s1636_s21 = sand.u32 1, %s1415_s13   ;;  %p2276_p9 = scmp.ne.s32.totalorder %s2266_s24, 0 }
  0x5b   : > { %s1050_s28 = sshll.u32 %s1636_s21, 8  ;;  %s186_s5 = scalar_lea.sflag [#allocation3], %s1636_s21 }
  0x5c   : > { %s1640_s6 = scalar_lea.vmem [#allocation2], %s1050_s28 }
  0x5d   : > { %1398 = dma.done.wait (%p2276_p9), %s186_s5, 4096  }
  0x5e   : > { %1400 = vsyncadd (%p2276_p9), %s186_s5, 4294963200  ;;  %p2277_p0 = scmp.ne.s32.totalorder %s2264_s22, 0 }
  0x60   : > { %1402 = dma.done.wait (%p2277_p0), [#allocation6], 4096  }
  0x61   : > { %1404 = vsyncadd (%p2277_p0), [#allocation6], 4294963200  ;;  %s1650_s26 = scalar_lea.vmem [#allocation7], %s1050_s28  ;;  %p1053_p6 = scmp.ne.s32.totalorder %s1423_s15, 0 }
  0x62   : > { %v223_v0 = vld [vmem:[%s1640_s6] sm:$0xff] (!%p1053_p6)  ;;  %v224_v1 = vld [vmem:[%s1640_s6 + $0x8] sm:$0xff] (!%p1053_p6)  ;;  %v225_v2 = vld [vmem:[%s1640_s6 + $0x10] sm:$0xff] (!%p1053_p6) }
  0x63   : > { %222 = sbr.rel (%p1053_p6) target bundleno = 115 (0x73), region = 44  ;;  %255 = vst [vmem:[%s1650_s26] sm:$0xff] (!%p1053_p6), %v223_v0  ;;  %256 = vst [vmem:[%s1650_s26 + $0x8] sm:$0xff] (!%p1053_p6), %v224_v1  ;;  %v226_v3 = vld [vmem:[%s1640_s6 + $0x18] sm:$0xff] (!%p1053_p6)  ;;  %v227_v4 = vld [vmem:[%s1640_s6 + $0x20] sm:$0xff] (!%p1053_p6) }
  0x64   : > { %257 = vst [vmem:[%s1650_s26 + $0x10] sm:$0xff] (!%p1053_p6), %v225_v2  ;;  %v228_v5 = vld [vmem:[%s1640_s6 + $0x28] sm:$0xff] (!%p1053_p6)  ;;  %258 = vst [vmem:[%s1650_s26 + $0x18] sm:$0xff] (!%p1053_p6), %v226_v3  ;;  %v229_v6 = vld [vmem:[%s1640_s6 + $0x30] sm:$0xff] (!%p1053_p6) }
  0x65   : > { %259 = vst [vmem:[%s1650_s26 + $0x20] sm:$0xff] (!%p1053_p6), %v227_v4  ;;  %260 = vst [vmem:[%s1650_s26 + $0x28] sm:$0xff] (!%p1053_p6), %v228_v5  ;;  %v230_v7 = vld [vmem:[%s1640_s6 + $0x38] sm:$0xff] (!%p1053_p6)  ;;  %v231_v8 = vld [vmem:[%s1640_s6 + $0x40] sm:$0xff] (!%p1053_p6) }
  0x66   : > { %261 = vst [vmem:[%s1650_s26 + $0x30] sm:$0xff] (!%p1053_p6), %v229_v6  ;;  %262 = vst [vmem:[%s1650_s26 + $0x38] sm:$0xff] (!%p1053_p6), %v230_v7  ;;  %v232_v9 = vld [vmem:[%s1640_s6 + $0x48] sm:$0xff] (!%p1053_p6)  ;;  %v233_v10 = vld [vmem:[%s1640_s6 + $0x50] sm:$0xff] (!%p1053_p6) }
  0x67   : > { %263 = vst [vmem:[%s1650_s26 + $0x40] sm:$0xff] (!%p1053_p6), %v231_v8  ;;  %v234_v11 = vld [vmem:[%s1640_s6 + $0x58] sm:$0xff] (!%p1053_p6)  ;;  %264 = vst [vmem:[%s1650_s26 + $0x48] sm:$0xff] (!%p1053_p6), %v232_v9  ;;  %v235_v12 = vld [vmem:[%s1640_s6 + $0x60] sm:$0xff] (!%p1053_p6) }
  0x68   : > { %265 = vst [vmem:[%s1650_s26 + $0x50] sm:$0xff] (!%p1053_p6), %v233_v10  ;;  %266 = vst [vmem:[%s1650_s26 + $0x58] sm:$0xff] (!%p1053_p6), %v234_v11  ;;  %v236_v13 = vld [vmem:[%s1640_s6 + $0x68] sm:$0xff] (!%p1053_p6)  ;;  %v237_v14 = vld [vmem:[%s1640_s6 + $0x70] sm:$0xff] (!%p1053_p6) }
  0x69   : > { %267 = vst [vmem:[%s1650_s26 + $0x60] sm:$0xff] (!%p1053_p6), %v235_v12  ;;  %268 = vst [vmem:[%s1650_s26 + $0x68] sm:$0xff] (!%p1053_p6), %v236_v13  ;;  %v238_v15 = vld [vmem:[%s1640_s6 + $0x78] sm:$0xff] (!%p1053_p6)  ;;  %v239_v16 = vld [vmem:[%s1640_s6 + $0x80] sm:$0xff] (!%p1053_p6) }
  0x6a   : > { %269 = vst [vmem:[%s1650_s26 + $0x70] sm:$0xff] %v237_v14  ;;  %v240_v17 = vld [vmem:[%s1640_s6 + $0x88] sm:$0xff]  ;;  %270 = vst [vmem:[%s1650_s26 + $0x78] sm:$0xff] %v238_v15  ;;  %v241_v18 = vld [vmem:[%s1640_s6 + $0x90] sm:$0xff] }
  0x6b   : > { %271 = vst [vmem:[%s1650_s26 + $0x80] sm:$0xff] %v239_v16  ;;  %272 = vst [vmem:[%s1650_s26 + $0x88] sm:$0xff] %v240_v17  ;;  %v242_v19 = vld [vmem:[%s1640_s6 + $0x98] sm:$0xff]  ;;  %v243_v20 = vld [vmem:[%s1640_s6 + $0xa0] sm:$0xff] }
  0x6c   : > { %273 = vst [vmem:[%s1650_s26 + $0x90] sm:$0xff] %v241_v18  ;;  %274 = vst [vmem:[%s1650_s26 + $0x98] sm:$0xff] %v242_v19  ;;  %v244_v21 = vld [vmem:[%s1640_s6 + $0xa8] sm:$0xff]  ;;  %v245_v22 = vld [vmem:[%s1640_s6 + $0xb0] sm:$0xff] }
  0x6d   : > { %275 = vst [vmem:[%s1650_s26 + $0xa0] sm:$0xff] %v243_v20  ;;  %v246_v23 = vld [vmem:[%s1640_s6 + $0xb8] sm:$0xff]  ;;  %276 = vst [vmem:[%s1650_s26 + $0xa8] sm:$0xff] %v244_v21  ;;  %v247_v24 = vld [vmem:[%s1640_s6 + $0xc0] sm:$0xff] }
  0x6e   : > { %277 = vst [vmem:[%s1650_s26 + $0xb0] sm:$0xff] %v245_v22  ;;  %278 = vst [vmem:[%s1650_s26 + $0xb8] sm:$0xff] %v246_v23  ;;  %v248_v25 = vld [vmem:[%s1640_s6 + $0xc8] sm:$0xff]  ;;  %v249_v26 = vld [vmem:[%s1640_s6 + $0xd0] sm:$0xff] }
  0x6f   : > { %279 = vst [vmem:[%s1650_s26 + $0xc0] sm:$0xff] %v247_v24  ;;  %280 = vst [vmem:[%s1650_s26 + $0xc8] sm:$0xff] %v248_v25  ;;  %v250_v27 = vld [vmem:[%s1640_s6 + $0xd8] sm:$0xff]  ;;  %v251_v28 = vld [vmem:[%s1640_s6 + $0xe0] sm:$0xff] }
  0x70   : > { %281 = vst [vmem:[%s1650_s26 + $0xd0] sm:$0xff] %v249_v26  ;;  %v252_v29 = vld [vmem:[%s1640_s6 + $0xe8] sm:$0xff]  ;;  %282 = vst [vmem:[%s1650_s26 + $0xd8] sm:$0xff] %v250_v27  ;;  %v253_v30 = vld [vmem:[%s1640_s6 + $0xf0] sm:$0xff] }
  0x71   : > { %283 = vst [vmem:[%s1650_s26 + $0xe0] sm:$0xff] %v251_v28  ;;  %284 = vst [vmem:[%s1650_s26 + $0xe8] sm:$0xff] %v252_v29  ;;  %v254_v31 = vld [vmem:[%s1640_s6 + $0xf8] sm:$0xff] }
  0x72   : > { %285 = vst [vmem:[%s1650_s26 + $0xf0] sm:$0xff] %v253_v30  ;;  %286 = vst [vmem:[%s1650_s26 + $0xf8] sm:$0xff] %v254_v31 }
  0x73 PF: > { %s1079_s22 = sshll.u32 %s1423_s15, 7  ;;  %v1445_v32 = vmov 0   ;;  %v1738_v48 = vld [vmem:[%s1650_s26] sm:$0xff]  ;;  %v1741_v49 = vld [vmem:[%s1650_s26 + $0x8] sm:$0xff]  ;;  %v1763_v57 = vld [vmem:[%s1650_s26 + $0x90] sm:$0xff]  ;;  %s1056_s20 = sshll.u32 %s1423_s15, 1 }
  0x74   : > { %480 = vmatprep.mubr.bf16.mxu0 %v1445_v32  ;;  %560 = vmatprep.mubr.bf16.mxu1 %v1445_v32  ;;  %s1720_s24 = scalar_lea.vmem [#allocation5], %s1079_s22  ;;  %v1745_v51 = vld [vmem:[%s1650_s26 + $0x80] sm:$0xff]  ;;  %v1748_v52 = vld [vmem:[%s1650_s26 + $0x88] sm:$0xff]  ;;  %v319_v53 = vpack.c.bf16 %v1741_v49, %v1738_v48  ;;  %v1755_v55 = vld [vmem:[%s1650_s26 + $0x10] sm:$0xff]  ;;  %s355_s7 = scalar_lea.vmem %s2253_s2, %s1056_s20 }
  0x75   : > { %v1191_v33 = vld [vmem:[%s1720_s24 + $0x4] ss:$8 sps:$4 sm:$0xff]   ;;  %v1193_v34 = vld [vmem:[%s1720_s24] ss:$8 sps:$4 sm:$0xff]   ;;  %v1194_v35 = vld [vmem:[%s1720_s24 + $0x14] ss:$8 sps:$4 sm:$0xff]   ;;  %v327_v54 = vpack.c.bf16 %v1748_v52, %v1745_v51 }
  0x76   : > { %448 = vmatprep.subr.bf16.mxu0 %v1191_v33  ;;  %1081 = vmatprep.subr.bf16.mxu1 %v1191_v33  ;;  %v1196_v36 = vld [vmem:[%s1720_s24 + $0x10] ss:$8 sps:$4 sm:$0xff]   ;;  %v1197_v37 = vld [vmem:[%s1720_s24 + $0x24] ss:$8 sps:$4 sm:$0xff]   ;;  %v1199_v38 = vld [vmem:[%s1720_s24 + $0x20] ss:$8 sps:$4 sm:$0xff]  }
  0x77   : > { %449 = vmatpush1.bf16.msra.mxu0 %v1193_v34  ;;  %1089 = vmatpush1.bf16.msra.mxu1 %v1193_v34  ;;  %v1200_v39 = vld [vmem:[%s1720_s24 + $0x34] ss:$8 sps:$4 sm:$0xff]   ;;  %v1202_v40 = vld [vmem:[%s1720_s24 + $0x30] ss:$8 sps:$4 sm:$0xff]   ;;  %v1203_v41 = vld [vmem:[%s1720_s24 + $0x44] ss:$8 sps:$4 sm:$0xff]   ;;  %v358_v34 = vlaneseq }
  0x78   : > { %450 = vmatprep.subr.bf16.mxu0 %v1194_v35  ;;  %1082 = vmatprep.subr.bf16.mxu1 %v1194_v35  ;;  %v1205_v42 = vld [vmem:[%s1720_s24 + $0x40] ss:$8 sps:$4 sm:$0xff]   ;;  %v1206_v43 = vld [vmem:[%s1720_s24 + $0x54] ss:$8 sps:$4 sm:$0xff]   ;;  %v1208_v44 = vld [vmem:[%s1720_s24 + $0x50] ss:$8 sps:$4 sm:$0xff]  }
  0x79   : > { %v1209_v45 = vld [vmem:[%s1720_s24 + $0x64] ss:$8 sps:$4 sm:$0xff]   ;;  %v1211_v46 = vld [vmem:[%s1720_s24 + $0x60] ss:$8 sps:$4 sm:$0xff]   ;;  %v1212_v47 = vld [vmem:[%s1720_s24 + $0x74] ss:$8 sps:$4 sm:$0xff]  }
  0x7a   : > { %v1214_v50 = vld [vmem:[%s1720_s24 + $0x70] ss:$8 sps:$4 sm:$0xff]   ;;  %v1773_v61 = vld [vmem:[%s1650_s26 + $0x20] sm:$0xff]  ;;  %v1778_v62 = vld [vmem:[%s1650_s26 + $0x28] sm:$0xff]  ;;  %v359_v35 = vshrl.u32 %v358_v34, 7  ;;  %s1080_s15 = sshll.u32 %s1427_s16, 12 }
  0x7b   : > { %451 = vmatpush1.bf16.msra.mxu0 %v1196_v36  ;;  %1090 = vmatpush1.bf16.msra.mxu1 %v1196_v36  ;;  %v1760_v56 = vld [vmem:[%s1650_s26 + $0x18] sm:$0xff]  ;;  %v1781_v63 = vld [vmem:[%s1650_s26 + $0xa0] sm:$0xff]  ;;  %v1784_v0 = vld [vmem:[%s1650_s26 + $0xa8] sm:$0xff]  ;;  %v321_v1 = vpack.c.bf16 %v1778_v62, %v1773_v61  ;;  %s943_s10 = sshll.u32 %s1650_s26, 4  ;;  %s2193_s28 = scalar_lea.hbm %s2254_s3, %s1080_s15  ;;  %s2195_s10 = int_to_ptr.vmem [resolvable:$true] %s943_s10 }
  0x7c   : > { %452 = vmatprep.subr.bf16.mxu0 %v1197_v37  ;;  %1083 = vmatprep.subr.bf16.mxu1 %v1197_v37  ;;  %v1766_v58 = vld [vmem:[%s1650_s26 + $0x98] sm:$0xff]  ;;  %v320_v59 = vpack.c.bf16 %v1760_v56, %v1755_v55  ;;  %v329_v2 = vpack.c.bf16 %v1784_v0, %v1781_v63  ;;  %v1791_v3 = vld [vmem:[%s1650_s26 + $0x30] sm:$0xff]  ;;  %v1809_v9 = vld [vmem:[%s1650_s26 + $0x40] sm:$0xff]  ;;  %s930_s5 = scalar_lea.sflag [#allocation4], %s1636_s21  ;;  %s1337_s16 = scalar_lea.vmem %s2195_s10, 4096 }
  0x7d   : > { %v328_v60 = vpack.c.bf16 %v1766_v58, %v1763_v57  ;;  %v1796_v4 = vld [vmem:[%s1650_s26 + $0x38] sm:$0xff]  ;;  %v1799_v5 = vld [vmem:[%s1650_s26 + $0xb0] sm:$0xff]  ;;  %v1814_v10 = vld [vmem:[%s1650_s26 + $0x48] sm:$0xff]  ;;  %p1338_p11 = scmp.ne.s32.totalorder %s2195_s10, %s1337_s16  ;;  %s1446_s6 = smov [#allocation7]  }
  0x7e   : > { %v1802_v6 = vld [vmem:[%s1650_s26 + $0xb8] sm:$0xff]  ;;  %v322_v7 = vpack.c.bf16 %v1796_v4, %v1791_v3  ;;  %v1817_v11 = vld [vmem:[%s1650_s26 + $0xc0] sm:$0xff]  ;;  %v1820_v12 = vld [vmem:[%s1650_s26 + $0xc8] sm:$0xff]  ;;  %v323_v13 = vpack.c.bf16 %v1814_v10, %v1809_v9  ;;  %s1341_s22 = sshll.u32 %s1446_s6, 4  ;;  %s1342_s22 = int_to_ptr.vmem [resolvable:$false] %s1341_s22 }
  0x7f   : > { %453 = vmatpush1.bf16.msra.mxu0 %v1199_v38  ;;  %1091 = vmatpush1.bf16.msra.mxu1 %v1199_v38  ;;  %v330_v8 = vpack.c.bf16 %v1802_v6, %v1799_v5  ;;  %v331_v14 = vpack.c.bf16 %v1820_v12, %v1817_v11  ;;  %v1827_v15 = vld [vmem:[%s1650_s26 + $0x50] sm:$0xff]  ;;  %v1832_v16 = vld [vmem:[%s1650_s26 + $0x58] sm:$0xff]  ;;  %v1845_v21 = vld [vmem:[%s1650_s26 + $0x60] sm:$0xff]  ;;  %v360_v38 = vsub.s32 0, %v359_v35  ;;  %p1339_p10 = pnand %p1338_p11, %p1575_p8  ;;  %s1343_s24 = scalar_lea.vmem %s1342_s22, 8192 }
  0x80   : > { %454 = vmatprep.subr.bf16.mxu0 %v1200_v39  ;;  %1084 = vmatprep.subr.bf16.mxu1 %v1200_v39  ;;  %v1835_v17 = vld [vmem:[%s1650_s26 + $0xd0] sm:$0xff]  ;;  %v1838_v18 = vld [vmem:[%s1650_s26 + $0xd8] sm:$0xff]  ;;  %v324_v19 = vpack.c.bf16 %v1832_v16, %v1827_v15  ;;  %v1850_v22 = vld [vmem:[%s1650_s26 + $0x68] sm:$0xff]  ;;  %p1344_p13 = scmp.lt.s32.totalorder %s2195_s10, %s1342_s22  ;;  %p1345_p3 = scmp.lt.s32.totalorder %s1343_s24, %s1337_s16 }
  0x81   : > { %v332_v20 = vpack.c.bf16 %v1838_v18, %v1835_v17  ;;  %v1853_v23 = vld [vmem:[%s1650_s26 + $0xe0] sm:$0xff]  ;;  %v1856_v24 = vld [vmem:[%s1650_s26 + $0xe8] sm:$0xff]  ;;  %v325_v25 = vpack.c.bf16 %v1850_v22, %v1845_v21  ;;  %v1863_v27 = vld [vmem:[%s1650_s26 + $0x70] sm:$0xff]  ;;  %p1340_p12 = pneg %p1339_p10 }
  0x82   : > { %v333_v26 = vpack.c.bf16 %v1856_v24, %v1853_v23  ;;  %v1868_v28 = vld [vmem:[%s1650_s26 + $0x78] sm:$0xff]  ;;  %v1871_v29 = vld [vmem:[%s1650_s26 + $0xf0] sm:$0xff]  ;;  %v356_v36 = vld [vmem:[%s355_s7] sm:$0x3]  ;;  %p1346_p7 = por %p1345_p3, %p1344_p13 }
  0x83   : > { %455 = vmatpush1.bf16.msra.mxu0 %v1202_v40  ;;  %1092 = vmatpush1.bf16.msra.mxu1 %v1202_v40  ;;  %2278 = vst [vmem:[#allocation11_spill] sm:$0xff] %v1868_v28  ;;  %2279 = vst [vmem:[#allocation12_spill] sm:$0xff] %v1871_v29  ;;  %v1874_v30 = vld [vmem:[%s1650_s26 + $0xf8] sm:$0xff]  ;;  %v326_v31 = vpack.c.bf16 %v1868_v28, %v1863_v27 }
  0x84   : > { %456 = vmatprep.subr.bf16.mxu0 %v1203_v41  ;;  %1085 = vmatprep.subr.bf16.mxu1 %v1203_v41  ;;  %2280 = vst [vmem:[#allocation13_spill] sm:$0xff] %v1874_v30  ;;  %v334_v33 = vpack.c.bf16 %v1874_v30, %v1871_v29  ;;  %p1347_p1 = pnand %p1346_p7, %p1340_p12 }
  0x87   : > { %457 = vmatpush1.bf16.msra.mxu0 %v1205_v42  ;;  %1093 = vmatpush1.bf16.msra.mxu1 %v1205_v42 }
  0x88   : > { %458 = vmatprep.subr.bf16.mxu0 %v1206_v43  ;;  %1086 = vmatprep.subr.bf16.mxu1 %v1206_v43 }
  0x8b   : > { %459 = vmatpush1.bf16.msra.mxu0 %v1208_v44  ;;  %1094 = vmatpush1.bf16.msra.mxu1 %v1208_v44 }
  0x8c   : > { %460 = vmatprep.subr.bf16.mxu0 %v1209_v45  ;;  %1087 = vmatprep.subr.bf16.mxu1 %v1209_v45 }
  0x8f   : > { %461 = vmatpush1.bf16.msra.mxu0 %v1211_v46  ;;  %1095 = vmatpush1.bf16.msra.mxu1 %v1211_v46 }
  0x90   : > { %462 = vmatprep.subr.bf16.mxu0 %v1212_v47  ;;  %1088 = vmatprep.subr.bf16.mxu1 %v1212_v47  ;;  %v1888_v47 = vrot.slane %v356_v36, %v360_v38 }
  0x93   : > { %463 = vmatpush1.bf16.msra.mxu0 %v1214_v50  ;;  %1096 = vmatpush1.bf16.msra.mxu1 %v1214_v50 }
  0x96   : > { %481 = vmatmul.mubr.bf16.vlgmr.msra.gmra.mrb[0].mxu0 %v319_v53  ;;  %561 = vmatmul.mubr.bf16.vlgmr.msra.gmra.mrb[0].mxu1 %v327_v54 }
  0x97   : > { %490 = vmatprep.mubr.bf16.mxu0 %v1445_v32  ;;  %570 = vmatprep.mubr.bf16.mxu1 %v1445_v32 }
  0x9e   : > { %491 = vmatmul.mubr.bf16.gmra.mrb[4].mxu0 %v320_v59  ;;  %571 = vmatmul.mubr.bf16.gmra.mrb[4].mxu1 %v328_v60 }
  0x9f   : > { %500 = vmatprep.mubr.bf16.mxu0 %v1445_v32  ;;  %580 = vmatprep.mubr.bf16.mxu1 %v1445_v32 }
  0xa6   : > { %501 = vmatmul.mubr.bf16.gmra.mrb[8].mxu0 %v321_v1  ;;  %581 = vmatmul.mubr.bf16.gmra.mrb[8].mxu1 %v329_v2 }
  0xa7   : > { %510 = vmatprep.mubr.bf16.mxu0 %v1445_v32  ;;  %590 = vmatprep.mubr.bf16.mxu1 %v1445_v32 }
  0xae   : > { %511 = vmatmul.mubr.bf16.gmra.mrb[12].mxu0 %v322_v7  ;;  %591 = vmatmul.mubr.bf16.gmra.mrb[12].mxu1 %v330_v8 }
  0xaf   : > { %520 = vmatprep.mubr.bf16.mxu0 %v1445_v32  ;;  %600 = vmatprep.mubr.bf16.mxu1 %v1445_v32 }
  0xb6   : > { %521 = vmatmul.mubr.bf16.gmra.mrb[16].mxu0 %v323_v13  ;;  %601 = vmatmul.mubr.bf16.gmra.mrb[16].mxu1 %v331_v14 }
  0xb7   : > { %530 = vmatprep.mubr.bf16.mxu0 %v1445_v32  ;;  %610 = vmatprep.mubr.bf16.mxu1 %v1445_v32 }
  0xbe   : > { %531 = vmatmul.mubr.bf16.gmra.mrb[20].mxu0 %v324_v19  ;;  %611 = vmatmul.mubr.bf16.gmra.mrb[20].mxu1 %v332_v20 }
  0xbf   : > { %540 = vmatprep.mubr.bf16.mxu0 %v1445_v32  ;;  %620 = vmatprep.mubr.bf16.mxu1 %v1445_v32 }
  0xc6   : > { %541 = vmatmul.mubr.bf16.gmra.mrb[24].mxu0 %v325_v25  ;;  %621 = vmatmul.mubr.bf16.gmra.mrb[24].mxu1 %v333_v26 }
  0xc7   : > { %550 = vmatprep.mubr.bf16.mxu0 %v1445_v32  ;;  %630 = vmatprep.mubr.bf16.mxu1 %v1445_v32  ;;  %v364_v32 = vsub.s32 1, %v359_v35 }
  0xc9   : > { %v1884_v37 = vrot.slane %v356_v36, %v364_v32 }
  0xce   : > { %551 = vmatmul.mubr.bf16.gmra.mrb[28].mxu0 %v326_v31  ;;  %631 = vmatmul.mubr.bf16.gmra.mrb[28].mxu1 %v334_v33 }
 0x169   : > { %v482_v39 = vpop.f32.mrb[0].mxu0  ;;  %v562_v40 = vpop.f32.mrb[0].mxu1 }
 0x16a   : > { %v484_v41 = vpop.f32.mrb[1].mxu0  ;;  %v564_v42 = vpop.f32.mrb[1].mxu1  ;;  %v1893_v8 = vadd.f32 %v482_v39, %v1888_v47  ;;  %v1896_v13 = vadd.f32 %v562_v40, %v1888_v47 }
 0x16b   : > { %v485_v43 = vadd.f32 %v484_v41, %v1884_v37  ;;  %v565_v44 = vadd.f32 %v564_v42, %v1884_v37  ;;  %v486_v45 = vpop.f32.mrb[2].mxu0  ;;  %v566_v46 = vpop.f32.mrb[2].mxu1 }
 0x16c   : > { %v488_v50 = vpop.f32.mrb[3].mxu0  ;;  %v568_v53 = vpop.f32.mrb[3].mxu1  ;;  %v1899_v20 = vadd.f32 %v486_v45, %v1888_v47  ;;  %v641_v32 = vmax.f32 %v1893_v8, 0.0  ;;  %v657_v36 = vmax.f32 %v1896_v13, 0.0  ;;  %v1906_v38 = vadd.f32 %v566_v46, %v1888_v47 }
 0x16d   : > { %v673_v54 = vmul.f32 0.5, %v485_v43  ;;  %v689_v59 = vmul.f32 0.5, %v565_v44  ;;  %v489_v60 = vadd.f32 %v488_v50, %v1884_v37  ;;  %v569_v1 = vadd.f32 %v568_v53, %v1884_v37 }
 0x16e   : > { %v642_v45 = vmax.f32 %v1899_v20, 0.0 }
 0x16f   : > { %1215 = vtanh.f32 %v673_v54  ;;  %v674_v2 = vmul.f32 0.5, %v489_v60  ;;  %v690_v7 = vmul.f32 0.5, %v569_v1  ;;  %v801_v60 = vsub.f32 %v1738_v48, %v641_v32 }
 0x170   : > { %1217 = vtanh.f32 %v689_v59  ;;  %v817_v1 = vsub.f32 %v1745_v51, %v657_v36  ;;  %v802_v20 = vsub.f32 %v1741_v49, %v642_v45 }
 0x171   : > { %1219 = vtanh.f32 %v674_v2  ;;  %v492_v14 = vpop.f32.mrb[4].mxu0  ;;  %v572_v19 = vpop.f32.mrb[4].mxu1  ;;  %v658_v2 = vmax.f32 %v1906_v38, 0.0 }
 0x172   : > { %1221 = vtanh.f32 %v690_v7  ;;  %v494_v25 = vpop.f32.mrb[5].mxu0  ;;  %v574_v26 = vpop.f32.mrb[5].mxu1  ;;  %v1912_v50 = vadd.f32 %v492_v14, %v1888_v47  ;;  %v1915_v53 = vadd.f32 %v572_v19, %v1888_v47 }
 0x173   : > { %v495_v31 = vadd.f32 %v494_v25, %v1884_v37  ;;  %v575_v33 = vadd.f32 %v574_v26, %v1884_v37  ;;  %v496_v34 = vpop.f32.mrb[6].mxu0  ;;  %v576_v35 = vpop.f32.mrb[6].mxu1  ;;  %v818_v19 = vsub.f32 %v1748_v52, %v658_v2 }
 0x174   : > { %v498_v39 = vpop.f32.mrb[7].mxu0  ;;  %v578_v40 = vpop.f32.mrb[7].mxu1  ;;  %v2281_v28 = vmax.f32 %v1912_v50, 0.0 }
 0x175   : > { %v675_v41 = vmul.f32 0.5, %v495_v31  ;;  %v691_v42 = vmul.f32 0.5, %v575_v33  ;;  %v499_v43 = vadd.f32 %v498_v39, %v1884_v37  ;;  %v579_v44 = vadd.f32 %v578_v40, %v1884_v37 }
 0x177   : > { %1223 = vtanh.f32 %v675_v41  ;;  %v676_v54 = vmul.f32 0.5, %v499_v43  ;;  %v692_v46 = vmul.f32 0.5, %v579_v44  ;;  %v1930_v43 = vadd.f32 %v496_v34, %v1888_v47 }
 0x178   : > { %1225 = vtanh.f32 %v691_v42  ;;  %v1933_v44 = vadd.f32 %v576_v35, %v1888_v47  ;;  %v2282_v35 = vmax.f32 %v1915_v53, 0.0 }
 0x179   : > { %v1216_v59 = vpop.eup %1215  ;;  %1227 = vtanh.f32 %v676_v54  ;;  %v502_v7 = vpop.f32.mrb[8].mxu0 }
 0x17a   : > { %v582_v8 = vpop.f32.mrb[8].mxu1  ;;  %v1218_v13 = vpop.eup %1217  ;;  %v737_v14 = vadd.f32 1.0, %v1216_v59  ;;  %1229 = vtanh.f32 %v692_v46  ;;  %v819_v29 = vsub.f32 %v1763_v57, %v2282_v35 }
 0x17b   : > { %v504_v25 = vpop.f32.mrb[9].mxu0  ;;  %v584_v26 = vpop.f32.mrb[9].mxu1  ;;  %v753_v33 = vadd.f32 1.0, %v1218_v13 }
 0x17c   : > { %v1220_v31 = vpop.eup %1219  ;;  %v505_v51 = vadd.f32 %v504_v25, %v1884_v37  ;;  %v585_v38 = vadd.f32 %v584_v26, %v1884_v37  ;;  %v1925_v39 = vpop.f32.mrb[10].mxu0  ;;  %v769_v42 = vmul.f32 0.5, %v737_v14  ;;  %v803_v14 = vsub.f32 %v1755_v55, %v2281_v28 }
 0x17d   : > { %v1927_v40 = vpop.f32.mrb[10].mxu1  ;;  %v1222_v41 = vpop.eup %1221  ;;  %v738_v49 = vadd.f32 1.0, %v1220_v31  ;;  %v785_v59 = vmul.f32 0.5, %v753_v33 }
 0x17e   : > { %v508_v54 = vpop.f32.mrb[11].mxu0  ;;  %v588_v46 = vpop.f32.mrb[11].mxu1  ;;  %v754_v13 = vadd.f32 1.0, %v1222_v41  ;;  %v677_v25 = vmul.f32 0.5, %v505_v51  ;;  %v693_v48 = vmul.f32 0.5, %v585_v38  ;;  %v833_v26 = vmul.f32 %v801_v60, %v769_v42 }
 0x17f   : > { %v770_v30 = vmul.f32 0.5, %v738_v49  ;;  %v849_v31 = vmul.f32 %v817_v1, %v785_v59  ;;  %v644_v51 = vmax.f32 %v1930_v43, 0.0  ;;  %v660_v42 = vmax.f32 %v1933_v44, 0.0 }
 0x180   : > { %v786_v34 = vmul.f32 0.5, %v754_v13  ;;  %1231 = vtanh.f32 %v677_v25  ;;  %v865_v33 = vadd.f32 %v833_v26, %v641_v32  ;;  %v509_v55 = vadd.f32 %v508_v54, %v1884_v37 }
 0x181   : > { %v834_v41 = vmul.f32 %v802_v20, %v770_v30  ;;  %1233 = vtanh.f32 %v693_v48  ;;  %v1224_v60 = vpop.eup %1223  ;;  %v881_v52 = vadd.f32 %v849_v31, %v657_v36  ;;  %v512_v28 = vpop.f32.mrb[12].mxu0  ;;  %v1947_v30 = vadd.f32 %v502_v7, %v1888_v47 }
 0x182   : > { %v850_v38 = vmul.f32 %v818_v19, %v786_v34  ;;  %v592_v1 = vpop.f32.mrb[12].mxu1  ;;  %v1226_v49 = vpop.eup %1225  ;;  %897 = vst [vmem:[%s1650_s26] sm:$0xff] %v865_v33  ;;  %v739_v59 = vadd.f32 1.0, %v1224_v60  ;;  %v589_v32 = vadd.f32 %v588_v46, %v1884_v37  ;;  %v1952_v44 = vadd.f32 %v582_v8, %v1888_v47 }
 0x183   : > { %v866_v57 = vadd.f32 %v834_v41, %v642_v45  ;;  %v514_v20 = vpop.f32.mrb[13].mxu0  ;;  %v594_v48 = vpop.f32.mrb[13].mxu1  ;;  %913 = vst [vmem:[%s1650_s26 + $0x80] sm:$0xff] %v881_v52  ;;  %v755_v43 = vadd.f32 1.0, %v1226_v49  ;;  %v678_v54 = vmul.f32 0.5, %v509_v55  ;;  %v804_v46 = vsub.f32 %v1760_v56, %v644_v51 }
 0x184   : > { %v1228_v36 = vpop.eup %1227  ;;  %v882_v19 = vadd.f32 %v850_v38, %v658_v2  ;;  %v1954_v13 = vpop.f32.mrb[14].mxu0  ;;  %v771_v7 = vmul.f32 0.5, %v739_v59  ;;  %v694_v31 = vmul.f32 0.5, %v589_v32  ;;  %v820_v33 = vsub.f32 %v1766_v58, %v660_v42 }
 0x185   : > { %v1956_v45 = vpop.f32.mrb[14].mxu1  ;;  %v1230_v25 = vpop.eup %1229  ;;  %898 = vst [vmem:[%s1650_s26 + $0x8] sm:$0xff] %v866_v57  ;;  %v740_v26 = vadd.f32 1.0, %v1228_v36  ;;  %v787_v2 = vmul.f32 0.5, %v755_v43  ;;  %1235 = vtanh.f32 %v678_v54  ;;  %v645_v52 = vmax.f32 %v1947_v30, 0.0 }
 0x186   : > { %v518_v34 = vpop.f32.mrb[15].mxu0  ;;  %v598_v35 = vpop.f32.mrb[15].mxu1  ;;  %914 = vst [vmem:[%s1650_s26 + $0x88] sm:$0xff] %v882_v19  ;;  %v756_v8 = vadd.f32 1.0, %v1230_v25  ;;  %v835_v41 = vmul.f32 %v803_v14, %v771_v7  ;;  %1237 = vtanh.f32 %v694_v31  ;;  %v661_v56 = vmax.f32 %v1952_v44, 0.0 }
 0x187   : > { %v772_v60 = vmul.f32 0.5, %v740_v26  ;;  %v851_v38 = vmul.f32 %v819_v29, %v787_v2  ;;  %v515_v49 = vadd.f32 %v514_v20, %v1884_v37  ;;  %v2283_v57 = vmax.f32 %v1912_v50, 0.0 }
 0x188   : > { %v788_v55 = vmul.f32 0.5, %v756_v8  ;;  %v1969_v58 = vadd.f32 %v1925_v39, %v1888_v47  ;;  %v595_v14 = vadd.f32 %v594_v48, %v1884_v37  ;;  %v2284_v29 = vmax.f32 %v1915_v53, 0.0 }
 0x189   : > { %v867_v59 = vadd.f32 %v835_v41, %v2283_v57  ;;  %v836_v32 = vmul.f32 %v804_v46, %v772_v60  ;;  %v1976_v43 = vadd.f32 %v1927_v40, %v1888_v47  ;;  %v679_v20 = vmul.f32 0.5, %v515_v49  ;;  %v1978_v50 = vpop.f32.mrb[16].mxu0  ;;  %v1980_v44 = vpop.f32.mrb[16].mxu1 }
 0x18a   : > { %v1232_v30 = vpop.eup %1231  ;;  %v883_v36 = vadd.f32 %v851_v38, %v2284_v29  ;;  %v852_v19 = vmul.f32 %v820_v33, %v788_v55  ;;  %v1984_v25 = vadd.f32 %v512_v28, %v1888_v47  ;;  %v695_v53 = vmul.f32 0.5, %v595_v14  ;;  %v524_v7 = vpop.f32.mrb[17].mxu0 }
 0x18b   : > { %v1234_v39 = vpop.eup %1233  ;;  %899 = vst [vmem:[%s1650_s26 + $0x10] sm:$0xff] %v867_v59  ;;  %v868_v54 = vadd.f32 %v836_v32, %v644_v51  ;;  %v741_v48 = vadd.f32 1.0, %v1232_v30  ;;  %v604_v46 = vpop.f32.mrb[17].mxu1  ;;  %v1988_v31 = vadd.f32 %v592_v1, %v1888_v47  ;;  %1239 = vtanh.f32 %v679_v20 }
 0x18c   : > { %915 = vst [vmem:[%s1650_s26 + $0x90] sm:$0xff] %v883_v36  ;;  %v884_v40 = vadd.f32 %v852_v19, %v660_v42  ;;  %v757_v26 = vadd.f32 1.0, %v1234_v39  ;;  %v1990_v2 = vpop.f32.mrb[18].mxu0  ;;  %v1992_v33 = vpop.f32.mrb[18].mxu1  ;;  %v805_v51 = vsub.f32 %v1773_v61, %v645_v52  ;;  %1241 = vtanh.f32 %v695_v53 }
 0x18d   : > { %900 = vst [vmem:[%s1650_s26 + $0x18] sm:$0xff] %v868_v54  ;;  %v773_v28 = vmul.f32 0.5, %v741_v48  ;;  %v519_v8 = vadd.f32 %v518_v34, %v1884_v37  ;;  %v528_v41 = vpop.f32.mrb[19].mxu0  ;;  %v608_v60 = vpop.f32.mrb[19].mxu1  ;;  %v821_v42 = vsub.f32 %v1781_v63, %v661_v56  ;;  %v646_v1 = vmax.f32 %v1969_v58, 0.0 }
 0x18e   : > { %916 = vst [vmem:[%s1650_s26 + $0x98] sm:$0xff] %v884_v40  ;;  %v789_v38 = vmul.f32 0.5, %v757_v26  ;;  %v599_v55 = vadd.f32 %v598_v35, %v1884_v37  ;;  %v662_v57 = vmax.f32 %v1976_v43, 0.0  ;;  %v647_v14 = vmax.f32 %v1984_v25, 0.0 }
 0x18f   : > { %v837_v49 = vmul.f32 %v805_v51, %v773_v28  ;;  %v680_v59 = vmul.f32 0.5, %v519_v8  ;;  %v1236_v61 = vpop.eup %1235  ;;  %v663_v34 = vmax.f32 %v1988_v31, 0.0  ;;  %v806_v35 = vsub.f32 %v1778_v62, %v646_v1 }
 0x190   : > { %v853_v32 = vmul.f32 %v821_v42, %v789_v38  ;;  %v696_v30 = vmul.f32 0.5, %v599_v55  ;;  %v1238_v29 = vpop.eup %1237  ;;  %v742_v63 = vadd.f32 1.0, %v1236_v61  ;;  %v822_v39 = vsub.f32 %v1784_v0, %v662_v57 }
 0x191   : > { %v869_v36 = vadd.f32 %v837_v49, %v645_v52  ;;  %1243 = vtanh.f32 %v680_v59  ;;  %v758_v19 = vadd.f32 1.0, %v1238_v29  ;;  %v2005_v43 = vpop.f32.mrb[20].mxu0  ;;  %v2007_v20 = vpop.f32.mrb[20].mxu1  ;;  %v525_v48 = vadd.f32 %v524_v7, %v1884_v37 }
 0x192   : > { %v885_v58 = vadd.f32 %v853_v32, %v661_v56  ;;  %1245 = vtanh.f32 %v696_v30  ;;  %v774_v54 = vmul.f32 0.5, %v742_v63  ;;  %v605_v52 = vadd.f32 %v604_v46, %v1884_v37  ;;  %v534_v53 = vpop.f32.mrb[21].mxu0  ;;  %v614_v40 = vpop.f32.mrb[21].mxu1 }
 0x193   : > { %901 = vst [vmem:[%s1650_s26 + $0x20] sm:$0xff] %v869_v36  ;;  %v790_v56 = vmul.f32 0.5, %v758_v19  ;;  %v807_v62 = vsub.f32 %v1791_v3, %v647_v14  ;;  %v823_v26 = vsub.f32 %v1799_v5, %v663_v34  ;;  %v529_v51 = vadd.f32 %v528_v41, %v1884_v37  ;;  %v2021_v0 = vpop.f32.mrb[22].mxu0  ;;  %v2023_v28 = vpop.f32.mrb[22].mxu1 }
 0x194   : > { %917 = vst [vmem:[%s1650_s26 + $0xa0] sm:$0xff] %v885_v58  ;;  %v838_v7 = vmul.f32 %v806_v35, %v774_v54  ;;  %v2027_v46 = vadd.f32 %v1954_v13, %v1888_v47  ;;  %v681_v8 = vmul.f32 0.5, %v525_v48  ;;  %v697_v42 = vmul.f32 0.5, %v605_v52  ;;  %v538_v38 = vpop.f32.mrb[23].mxu0  ;;  %v618_v3 = vpop.f32.mrb[23].mxu1 }
 0x195   : > { %v1240_v55 = vpop.eup %1239  ;;  %v854_v49 = vmul.f32 %v822_v39, %v790_v56  ;;  %v2031_v5 = vadd.f32 %v1956_v45, %v1888_v47  ;;  %v2035_v41 = vadd.f32 %v1978_v50, %v1888_v47  ;;  %v682_v59 = vmul.f32 0.5, %v529_v51 }
 0x196   : > { %v1242_v61 = vpop.eup %1241  ;;  %v870_v13 = vadd.f32 %v838_v7, %v646_v1  ;;  %v743_v32 = vadd.f32 1.0, %v1240_v55  ;;  %1247 = vtanh.f32 %v681_v8  ;;  %v609_v30 = vadd.f32 %v608_v60, %v1884_v37 }
 0x197   : > { %v886_v29 = vadd.f32 %v854_v49, %v662_v57  ;;  %v759_v36 = vadd.f32 1.0, %v1242_v61  ;;  %v2040_v63 = vadd.f32 %v1980_v44, %v1888_v47  ;;  %1249 = vtanh.f32 %v697_v42 }
 0x198   : > { %902 = vst [vmem:[%s1650_s26 + $0x28] sm:$0xff] %v870_v13  ;;  %v775_v45 = vmul.f32 0.5, %v743_v32  ;;  %v648_v50 = vmax.f32 %v2027_v46, 0.0  ;;  %1251 = vtanh.f32 %v682_v59  ;;  %v698_v58 = vmul.f32 0.5, %v609_v30 }
 0x199   : > { %918 = vst [vmem:[%s1650_s26 + $0xa8] sm:$0xff] %v886_v29  ;;  %v791_v35 = vmul.f32 0.5, %v759_v36  ;;  %v664_v1 = vmax.f32 %v2031_v5, 0.0  ;;  %v649_v19 = vmax.f32 %v2035_v41, 0.0  ;;  %v535_v60 = vadd.f32 %v534_v53, %v1884_v37  ;;  %v2048_v57 = vpop.f32.mrb[24].mxu0  ;;  %v2050_v39 = vpop.f32.mrb[24].mxu1 }
 0x19a   : > { %v839_v54 = vmul.f32 %v807_v62, %v775_v45  ;;  %v2054_v48 = vadd.f32 %v1990_v2, %v1888_v47  ;;  %1253 = vtanh.f32 %v698_v58  ;;  %v615_v52 = vadd.f32 %v614_v40, %v1884_v37  ;;  %v544_v56 = vpop.f32.mrb[25].mxu0  ;;  %v2057_v51 = vpop.f32.mrb[25].mxu1 }
 0x19b   : > { %v1244_v44 = vpop.eup %1243  ;;  %v855_v46 = vmul.f32 %v823_v26, %v791_v35  ;;  %v665_v8 = vmax.f32 %v2040_v63, 0.0  ;;  %v2062_v42 = vadd.f32 %v1992_v33, %v1888_v47  ;;  %v2064_v62 = vpop.f32.mrb[26].mxu0  ;;  %v683_v49 = vmul.f32 0.5, %v535_v60 }
 0x19c   : > { %v1246_v7 = vpop.eup %1245  ;;  %v744_v53 = vadd.f32 1.0, %v1244_v44  ;;  %v2066_v2 = vpop.f32.mrb[26].mxu1  ;;  %v871_v40 = vadd.f32 %v839_v54, %v647_v14  ;;  %v699_v5 = vmul.f32 0.5, %v615_v52  ;;  %v808_v33 = vsub.f32 %v1796_v4, %v648_v50 }
 0x19d   : > { %v760_v55 = vadd.f32 1.0, %v1246_v7  ;;  %v2070_v59 = vpop.f32.mrb[27].mxu0  ;;  %v2072_v26 = vpop.f32.mrb[27].mxu1  ;;  %v887_v61 = vadd.f32 %v855_v46, %v663_v34  ;;  %v824_v32 = vsub.f32 %v1802_v6, %v664_v1  ;;  %v650_v25 = vmax.f32 %v2054_v48, 0.0 }
 0x19e   : > { %v776_v13 = vmul.f32 0.5, %v744_v53  ;;  %903 = vst [vmem:[%s1650_s26 + $0x30] sm:$0xff] %v871_v40  ;;  %1255 = vtanh.f32 %v683_v49  ;;  %v539_v29 = vadd.f32 %v538_v38, %v1884_v37  ;;  %v619_v36 = vadd.f32 %v618_v3, %v1884_v37 }
 0x19f   : > { %v792_v30 = vmul.f32 0.5, %v760_v55  ;;  %919 = vst [vmem:[%s1650_s26 + $0xb0] sm:$0xff] %v887_v61  ;;  %1257 = vtanh.f32 %v699_v5  ;;  %v809_v4 = vsub.f32 %v1809_v9, %v649_v19  ;;  %v825_v6 = vsub.f32 %v1817_v11, %v665_v8 }
 0x1a0   : > { %v840_v14 = vmul.f32 %v808_v33, %v776_v13  ;;  %v1248_v45 = vpop.eup %1247  ;;  %v666_v34 = vmax.f32 %v2062_v42, 0.0  ;;  %v684_v44 = vmul.f32 0.5, %v539_v29  ;;  %v700_v38 = vmul.f32 0.5, %v619_v36 }
 0x1a1   : > { %v856_v31 = vmul.f32 %v824_v32, %v792_v30  ;;  %v1250_v58 = vpop.eup %1249  ;;  %v745_v60 = vadd.f32 1.0, %v1248_v45  ;;  %v2090_v54 = vpop.f32.mrb[28].mxu0  ;;  %v810_v7 = vsub.f32 %v1814_v10, %v650_v25  ;;  %v2097_v11 = vadd.f32 %v2005_v43, %v1888_v47 }
 0x1a2   : > { %v872_v35 = vadd.f32 %v840_v14, %v648_v50  ;;  %v2092_v3 = vpop.f32.mrb[28].mxu1  ;;  %v1252_v48 = vpop.eup %1251  ;;  %v761_v9 = vadd.f32 1.0, %v1250_v58  ;;  %v2104_v40 = vadd.f32 %v2007_v20, %v1888_v47  ;;  %1259 = vtanh.f32 %v684_v44 }
 0x1a3   : > { %v888_v52 = vadd.f32 %v856_v31, %v664_v1  ;;  %v554_v46 = vpop.f32.mrb[29].mxu0  ;;  %v2099_v53 = vpop.f32.mrb[29].mxu1  ;;  %v777_v50 = vmul.f32 0.5, %v745_v60  ;;  %v746_v42 = vadd.f32 1.0, %v1252_v48  ;;  %v826_v43 = vsub.f32 %v1820_v12, %v666_v34 }
 0x1a4   : > { %904 = vst [vmem:[%s1650_s26 + $0x38] sm:$0xff] %v872_v35  ;;  %v2106_v55 = vpop.f32.mrb[30].mxu0  ;;  %v2108_v1 = vpop.f32.mrb[30].mxu1  ;;  %v793_v49 = vmul.f32 0.5, %v761_v9  ;;  %1261 = vtanh.f32 %v700_v38  ;;  %v545_v5 = vadd.f32 %v544_v56, %v1884_v37  ;;  %v2119_v30 = vadd.f32 %v2021_v0, %v1888_v47 }
 0x1a5   : > { %v1254_v10 = vpop.eup %1253  ;;  %920 = vst [vmem:[%s1650_s26 + $0xb8] sm:$0xff] %v888_v52  ;;  %v2113_v61 = vpop.f32.mrb[31].mxu0  ;;  %v841_v13 = vmul.f32 %v809_v4, %v777_v50  ;;  %v778_v20 = vmul.f32 0.5, %v746_v42  ;;  %v651_v29 = vmax.f32 %v2097_v11, 0.0  ;;  %v625_v12 = vadd.f32 %v2057_v51, %v1884_v37 }
 0x1a6   : > { %v2115_v33 = vpop.f32.mrb[31].mxu1  ;;  %v762_v32 = vadd.f32 1.0, %v1254_v10  ;;  %v857_v14 = vmul.f32 %v825_v6, %v793_v49  ;;  %v685_v36 = vmul.f32 0.5, %v545_v5  ;;  %v667_v4 = vmax.f32 %v2104_v40, 0.0 }
 0x1a7   : > { %v873_v56 = vadd.f32 %v841_v13, %v649_v19  ;;  %v842_v45 = vmul.f32 %v810_v7, %v778_v20  ;;  %v617_v6 = vadd.f32 %v2023_v28, %v1888_v47  ;;  %v701_v35 = vmul.f32 0.5, %v625_v12 }
 0x1a8   : > { %v794_v31 = vmul.f32 0.5, %v762_v32  ;;  %v1256_v58 = vpop.eup %1255  ;;  %v889_v0 = vadd.f32 %v857_v14, %v665_v8  ;;  %1263 = vtanh.f32 %v685_v36  ;;  %v2134_v19 = vadd.f32 %v2048_v57, %v1888_v47 }
 0x1a9   : > { %v1258_v60 = vpop.eup %1257  ;;  %905 = vst [vmem:[%s1650_s26 + $0x40] sm:$0xff] %v873_v56  ;;  %v874_v51 = vadd.f32 %v842_v45, %v650_v25  ;;  %v747_v44 = vadd.f32 1.0, %v1256_v58  ;;  %v811_v63 = vsub.f32 %v1827_v15, %v651_v29  ;;  %1265 = vtanh.f32 %v701_v35 }
 0x1aa   : > { %v858_v41 = vmul.f32 %v826_v43, %v794_v31  ;;  %921 = vst [vmem:[%s1650_s26 + $0xc0] sm:$0xff] %v889_v0  ;;  %v763_v38 = vadd.f32 1.0, %v1258_v60  ;;  %v549_v28 = vadd.f32 %v2070_v59, %v1884_v37  ;;  %v827_v48 = vsub.f32 %v1835_v17, %v667_v4 }
 0x1ab   : > { %906 = vst [vmem:[%s1650_s26 + $0x48] sm:$0xff] %v874_v51  ;;  %v779_v25 = vmul.f32 0.5, %v747_v44  ;;  %v629_v52 = vadd.f32 %v2072_v26, %v1884_v37  ;;  %v652_v57 = vmax.f32 %v2119_v30, 0.0  ;;  %v668_v7 = vmax.f32 %v617_v6, 0.0 }
 0x1ac   : > { %v890_v8 = vadd.f32 %v858_v41, %v666_v34  ;;  %v795_v9 = vmul.f32 0.5, %v763_v38  ;;  %v686_v11 = vmul.f32 0.5, %v549_v28  ;;  %v1260_v50 = vpop.eup %1259  ;;  %v653_v42 = vmax.f32 %v2134_v19, 0.0 }
 0x1ad   : > { %v843_v15 = vmul.f32 %v811_v63, %v779_v25  ;;  %v702_v59 = vmul.f32 0.5, %v629_v52  ;;  %v555_v34 = vadd.f32 %v554_v46, %v1884_v37  ;;  %v748_v10 = vadd.f32 1.0, %v1260_v50 }
 0x1ae   : > { %922 = vst [vmem:[%s1650_s26 + $0xc8] sm:$0xff] %v890_v8  ;;  %v1262_v40 = vpop.eup %1261  ;;  %v859_v17 = vmul.f32 %v827_v48, %v795_v9  ;;  %1267 = vtanh.f32 %v686_v11  ;;  %v623_v43 = vadd.f32 %v2050_v39, %v1888_v47  ;;  %v812_v13 = vsub.f32 %v1832_v16, %v652_v57 }
 0x1af   : > { %v875_v26 = vadd.f32 %v843_v15, %v651_v29  ;;  %v764_v49 = vadd.f32 1.0, %v1262_v40  ;;  %1269 = vtanh.f32 %v702_v59  ;;  %v780_v20 = vmul.f32 0.5, %v748_v10 }
 0x1b0   : > { %v891_v5 = vadd.f32 %v859_v17, %v667_v4  ;;  %v687_v32 = vmul.f32 0.5, %v555_v34  ;;  %v828_v30 = vsub.f32 %v1838_v18, %v668_v7  ;;  %v813_v14 = vsub.f32 %v1845_v21, %v653_v42 }
 0x1b1   : > { %907 = vst [vmem:[%s1650_s26 + $0x50] sm:$0xff] %v875_v26  ;;  %v796_v46 = vmul.f32 0.5, %v764_v49  ;;  %v635_v36 = vadd.f32 %v2099_v53, %v1884_v37  ;;  %v844_v12 = vmul.f32 %v812_v13, %v780_v20  ;;  %v547_v39 = vadd.f32 %v2064_v62, %v1888_v47 }
 0x1b2   : > { %v1264_v29 = vpop.eup %1263  ;;  %923 = vst [vmem:[%s1650_s26 + $0xd0] sm:$0xff] %v891_v5  ;;  %1271 = vtanh.f32 %v687_v32  ;;  %v559_v16 = vadd.f32 %v2113_v61, %v1884_v37  ;;  %v669_v45 = vmax.f32 %v623_v43, 0.0  ;;  %v627_v53 = vadd.f32 %v2066_v2, %v1888_v47 }
 0x1b3   : > { %v860_v56 = vmul.f32 %v828_v30, %v796_v46  ;;  %v749_v18 = vadd.f32 1.0, %v1264_v29  ;;  %v703_v31 = vmul.f32 0.5, %v635_v36  ;;  %v1266_v21 = vpop.eup %1265  ;;  %v876_v4 = vadd.f32 %v844_v12, %v652_v57  ;;  %v2287_v29 = vld [vmem:[#allocation13_spill] sm:$0xff] }
 0x1b4   : > { %v688_v58 = vmul.f32 0.5, %v559_v16  ;;  %v639_v0 = vadd.f32 %v2115_v33, %v1884_v37  ;;  %v765_v35 = vadd.f32 1.0, %v1266_v21  ;;  %v654_v61 = vmax.f32 %v547_v39, 0.0 }
 0x1b5   : > { %v892_v62 = vadd.f32 %v860_v56, %v668_v7  ;;  %v781_v6 = vmul.f32 0.5, %v749_v18  ;;  %1273 = vtanh.f32 %v703_v31  ;;  %908 = vst [vmem:[%s1650_s26 + $0x58] sm:$0xff] %v876_v4  ;;  %v829_v51 = vsub.f32 %v1853_v23, %v669_v45 }
 0x1b6   : > { %1275 = vtanh.f32 %v688_v58  ;;  %v704_v60 = vmul.f32 0.5, %v639_v0  ;;  %v797_v44 = vmul.f32 0.5, %v765_v35  ;;  %v553_v2 = vadd.f32 %v2090_v54, %v1888_v47 }
 0x1b7   : > { %924 = vst [vmem:[%s1650_s26 + $0xd8] sm:$0xff] %v892_v62  ;;  %v845_v41 = vmul.f32 %v813_v14, %v781_v6  ;;  %v670_v63 = vmax.f32 %v627_v53, 0.0  ;;  %v814_v8 = vsub.f32 %v1850_v22, %v654_v61  ;;  %v633_v25 = vadd.f32 %v2092_v3, %v1888_v47 }
 0x1b8   : > { %v1268_v19 = vpop.eup %1267  ;;  %1277 = vtanh.f32 %v704_v60  ;;  %v861_v38 = vmul.f32 %v829_v51, %v797_v44  ;;  %v655_v9 = vmax.f32 %v553_v2, 0.0  ;;  %v557_v54 = vadd.f32 %v2106_v55, %v1888_v47 }
 0x1b9   : > { %v1270_v37 = vpop.eup %1269  ;;  %v877_v33 = vadd.f32 %v845_v41, %v653_v42  ;;  %v750_v28 = vadd.f32 1.0, %v1268_v19  ;;  %v830_v7 = vsub.f32 %v1856_v24, %v670_v63  ;;  %v637_v22 = vadd.f32 %v2108_v1, %v1888_v47  ;;  %v2285_v1 = vld [vmem:[#allocation12_spill] sm:$0xff] }
 0x1ba   : > { %v766_v48 = vadd.f32 1.0, %v1270_v37  ;;  %v893_v23 = vadd.f32 %v861_v38, %v669_v45  ;;  %v671_v42 = vmax.f32 %v633_v25, 0.0  ;;  %v815_v40 = vsub.f32 %v1863_v27, %v655_v9  ;;  %v2286_v27 = vld [vmem:[#allocation11_spill] sm:$0xff] }
 0x1bb   : > { %909 = vst [vmem:[%s1650_s26 + $0x60] sm:$0xff] %v877_v33  ;;  %v782_v52 = vmul.f32 0.5, %v750_v28  ;;  %v656_v55 = vmax.f32 %v557_v54, 0.0  ;;  %v672_v43 = vmax.f32 %v637_v22, 0.0 }
 0x1bc   : > { %v1272_v57 = vpop.eup %1271  ;;  %v798_v11 = vmul.f32 0.5, %v766_v48  ;;  %925 = vst [vmem:[%s1650_s26 + $0xe0] sm:$0xff] %v893_v23  ;;  %v831_v13 = vsub.f32 %v2285_v1, %v671_v42 }
 0x1bd   : > { %v846_v50 = vmul.f32 %v814_v8, %v782_v52  ;;  %v751_v15 = vadd.f32 1.0, %v1272_v57  ;;  %v816_v30 = vsub.f32 %v2286_v27, %v656_v55  ;;  %v832_v12 = vsub.f32 %v2287_v29, %v672_v43 }
 0x1be   : > { %v862_v3 = vmul.f32 %v830_v7, %v798_v11 }
 0x1bf   : > { %v1274_v59 = vpop.eup %1273  ;;  %v878_v34 = vadd.f32 %v846_v50, %v654_v61  ;;  %v783_v17 = vmul.f32 0.5, %v751_v15 }
 0x1c0   : > { %v1276_v10 = vpop.eup %1275  ;;  %v894_v24 = vadd.f32 %v862_v3, %v670_v63  ;;  %v767_v26 = vadd.f32 1.0, %v1274_v59 }
 0x1c1   : > { %910 = vst [vmem:[%s1650_s26 + $0x68] sm:$0xff] %v878_v34  ;;  %v847_v49 = vmul.f32 %v815_v40, %v783_v17  ;;  %v752_v5 = vadd.f32 1.0, %v1276_v10 }
 0x1c2   : > { %v1278_v47 = vpop.eup %1277  ;;  %926 = vst [vmem:[%s1650_s26 + $0xe8] sm:$0xff] %v894_v24  ;;  %v799_v20 = vmul.f32 0.5, %v767_v26 }
 0x1c3   : > { %v879_v32 = vadd.f32 %v847_v49, %v655_v9  ;;  %v784_v46 = vmul.f32 0.5, %v752_v5  ;;  %v768_v14 = vadd.f32 1.0, %v1278_v47 }
 0x1c4   : > { %v863_v36 = vmul.f32 %v831_v13, %v799_v20 }
 0x1c5   : > { %911 = vst [vmem:[%s1650_s26 + $0x70] sm:$0xff] %v879_v32  ;;  %v848_v39 = vmul.f32 %v816_v30, %v784_v46  ;;  %v800_v16 = vmul.f32 0.5, %v768_v14 }
 0x1c6   : > { %v895_v56 = vadd.f32 %v863_v36, %v671_v42 }
 0x1c7   : > { %v880_v45 = vadd.f32 %v848_v39, %v656_v55  ;;  %v864_v18 = vmul.f32 %v832_v12, %v800_v16 }
 0x1c8   : > { %927 = vst [vmem:[%s1650_s26 + $0xf0] sm:$0xff] %v895_v56 }
 0x1c9   : > { %912 = vst [vmem:[%s1650_s26 + $0x78] sm:$0xff] %v880_v45  ;;  %v896_v31 = vadd.f32 %v864_v18, %v672_v43 }
 0x1cb   : > { %928 = vst [vmem:[%s1650_s26 + $0xf8] sm:$0xff] %v896_v31 }
 0x1cc   : > { %1350 = shalt.err (!%p1347_p1)
}
 0x1cd   : > { %s1351_s26 = scalar_lea.hbm %s2193_s28, 4096  ;;  %s1355_s27 = scalar_lea.hbm %s2254_s3, 8192 }
 0x1ce   : > { %p1352_p2 = scmp.ne.s32.totalorder %s2193_s28, %s1351_s26  ;;  %p1356_p9 = scmp.lt.u32.totalorder %s2193_s28, %s2254_s3 }
 0x1cf   : > { %p1357_p0 = scmp.lt.u32.totalorder %s1355_s27, %s1351_s26  ;;  %p1359_p11 = scmp.lt.u32.totalorder %s1351_s26, %s2193_s28 }
 0x1d0   : > { %p1353_p4 = pnand %p1352_p2, %p1575_p8 }
 0x1d1   : > { %p1358_p6 = por %p1357_p0, %p1356_p9 }
 0x1d2   : > { %p1354_p5 = pneg %p1353_p4 }
 0x1d3   : > { %p1360_p10 = por %p1359_p11, %p1358_p6 }
 0x1d5   : > { %p1361_p12 = pnand %p1360_p10, %p1354_p5 }
 0x1d7   : > { %1364 = shalt.err (!%p1361_p12)
}
 0x1d8   : > { %s1447_s8 = smov 128   ;;  %s1448_s9 = smov 8  }
 0x1d9   : > { %1103 = dma.vmem_to_hbm [thread:$0]  (%p1575_p8), %s2195_s10, 4096, %s2193_s28, %s930_s5, %s1447_s8, %s1447_s8, %s1448_s9  }
 0x1da PF: > { %p1120_p13 = scmp.ge.s32.totalorder %s1439_s19, 2  ;;  %s958_s16 = sand.u32 1, %s1411_s12  }
 0x1db   : > { %p2288_p3 = scmp.ne.s32.totalorder %s2267_s25, 0  ;;  %s959_s6 = scalar_lea.sflag [#allocation4], %s958_s16 }
 0x1dd   : > { %p1114_p7 = pnand %p1120_p13, %p2288_p3 }
 0x1df   : > { %1406 = dma.done.wait (!%p1114_p7), %s959_s6, 4096  }
 0x1e0   : > { %1408 = vsyncadd (!%p1114_p7), %s959_s6, 4294963200  ;;  %s20_s19 = sadd.s32 1, %s1439_s19   ;;  %s2289_s12 = smov %s1415_s13 }
 0x1e1   : > { %p17_p1 = scmp.ge.s32.totalorder %s20_s19, 6   ;;  %s2290_s13 = smov %s1419_s14 }
 0x1e2   : > { %s2291_s14 = smov %s1592_s11  ;;  %s2292_s15 = smov %s1431_s17 }
 0x1e3   : > { %s2293_s16 = smov %s1435_s18  ;;  %s2294_s17 = smov %s2297_s30 }
 0x1e4   : > { %s2295_s18 = smov %s2301_s4  ;;  %19 = sbr.rel (!%p17_p1) target bundleno = 8 (0x8), region = 87 }
 0x1eb   :  { %964 = vsyncpa [#allocation3], 1 }
 0x1ec   :  { %966 = vsyncpa [#allocation3 + $0x1], 1 }
 0x1ed   :  { %967 = vsyncpa [#allocation6], 1 }
 0x1ee   :  { %968 = vsyncpa [#allocation4], 1 }
 0x1ef   :  { %970 = vsyncpa [#allocation4 + $0x1], 1 }

// kernel: tpu_custom_call.1
= control target key start
LH: loop header
LB: loop body
LE: loop exit
PB: predicated region body
PF: predicated region fallthrough
CT: control target
= control target key end

     0   :  { %8 = vsyncpa [#allocation3], 0  ;;  %s2251_s0 = inlined_call_operand.hbm [shape: f32[512,128], index: 0, kind: input, shape index: {}]   ;;  %s2252_s1 = inlined_call_operand.hbm [shape: bf16[2,128,256], index: 1, kind: input, shape index: {}]   ;;  %s2253_s2 = inlined_call_operand.vmem [shape: f32[2,1,256], index: 2, kind: input, shape index: {}]   ;;  %s2254_s3 = inlined_call_operand.hbm [shape: f32[512,128], index: 3, kind: output, shape index: {}]  }
   0x1   :  { %10 = vsyncpa [#allocation3 + $0x1], 0 }
   0x2   :  { %11 = vsyncpa [#allocation6], 0 }
   0x3   :  { %12 = vsyncpa [#allocation4], 0 }
   0x4   :  { %14 = vsyncpa [#allocation4 + $0x1], 0  ;;  %s1469_s12 = smov 0   ;;  %s1471_s13 = smov 0  }
   0x5   :  { %s1473_s14 = smov 0   ;;  %s1475_s15 = smov 0  }
   0x6   :  { %s1477_s16 = smov 0   ;;  %s1479_s17 = smov 0  }
   0x7   :  { %s1481_s18 = smov 0   ;;  %s1483_s19 = smov 0  }
   0x8 LB: > { %s1041_s20 = sadd.s32 4294967295, %s1439_s19   ;;  %s1042_s21 = sadd.s32 4294967294, %s1439_s19   ;;  %s1439_s19 = sphi %s1483_s19, %s20_s19   ;;  %s1435_s18 = sphi %s1481_s18, %s2295_s18   ;;  %s1431_s17 = sphi %s1479_s17, %s2294_s17   ;;  %s1427_s16 = sphi %s1477_s16, %s2293_s16   ;;  %s1423_s15 = sphi %s1475_s15, %s2292_s15   ;;  %s1419_s14 = sphi %s1473_s14, %s2291_s14   ;;  %s1415_s13 = sphi %s1471_s13, %s2290_s13   ;;  %s1411_s12 = sphi %s1469_s12, %s2289_s12  }
   0x9   : > { %p52_p0 = scmp.ne.s32.totalorder %s1415_s13, %s1411_s12  ;;  %p1513_p1 = scmp.eq.s32.totalorder %s1041_s20, 0 }
   0xa   : > { %p1517_p2 = scmp.eq.s32.totalorder %s1041_s20, 3  ;;  %p124_p3 = scmp.eq.s32.totalorder %s1042_s21, 3 }
   0xb   : > { %s2264_s22 = scalar_select %p1513_p1, 1, 0 }
   0xc   : > { %s2265_s23 = scalar_select %p1517_p2, 1, 0 }
   0xd   : > { %p1523_p4 = por %p1513_p1, %p52_p0  ;;  %p1043_p5 = scmp.ge.s32.totalorder %s1439_s19, 1 }
   0xe   : > { %p1528_p6 = por %p124_p3, %p52_p0  ;;  %p131_p7 = scmp.lt.s32.totalorder %s1439_s19, 5 }
   0xf   : > { %s2266_s24 = scalar_select %p1523_p4, 1, 0 }
  0x10   : > { %s2267_s25 = scalar_select %p1528_p6, 1, 0 }
  0x11   : > { %p1533_p8 = pnand %p1043_p5, %p131_p7  ;;  %s1441_s27 = smov [#allocation5]  }
  0x12   : > { %s143_s28 = sshll.u32 %s1441_s27, 4  ;;  %s1279_s5 = scalar_lea.hbm %s2252_s1, 4096  ;;  %s144_s28 = int_to_ptr.vmem [resolvable:$true] %s143_s28 }
  0x13   : > { %s2268_s26 = scalar_select %p1533_p8, 1, 0 }
  0x14   : > { %p1105_p9 = pneg %p1533_p8  ;;  %p1280_p11 = scmp.ne.s32.totalorder %s2252_s1, %s1279_s5 }
  0x15   : > { %p1286_p3 = scmp.lt.u32.totalorder %s1279_s5, %s2252_s1 }
  0x16   : > { %p1541_p10 = pnand %p1105_p9, %p1513_p1 }
  0x18   : > { %p1281_p12 = pneg %p1541_p10 }
  0x1a   : > { %p1282_p13 = pnand %p1281_p12, %p1280_p11 }
  0x1c   : > { %p1283_p0 = pneg %p1282_p13 }
  0x1e   : > { %p1288_p5 = pnand %p1286_p3, %p1283_p0 }
  0x20   : > { %1291 = shalt.err (!%p1288_p5)
}
  0x21   : > { %s1292_s10 = scalar_lea.vmem %s144_s28, 4096  ;;  %p1300_p1 = scmp.lt.s32.totalorder %s144_s28, %s144_s28 }
  0x22   : > { %p1293_p7 = scmp.ne.s32.totalorder %s144_s28, %s1292_s10  ;;  %p1301_p4 = scmp.lt.s32.totalorder %s1292_s10, %s1292_s10 }
  0x24   : > { %p1295_p9 = pnand %p1293_p7, %p1281_p12  ;;  %p1302_p8 = por %p1301_p4, %p1300_p1 }
  0x26   : > { %p1296_p6 = pneg %p1295_p9 }
  0x28   : > { %p1303_p2 = pnand %p1302_p8, %p1296_p6 }
  0x2a   : > { %1306 = shalt.err (!%p1303_p2)
}
  0x2b   : > { %s2259_s11 = smov 128   ;;  %s2260_s20 = smov 8  }
  0x2c   : > { %1108 = dma.hbm_to_vmem [thread:$0]  (!%p1541_p10), %s2252_s1, 4096, %s144_s28, [#allocation6], %s2259_s11, %s2259_s11, %s2260_s20  }
  0x2d   : > { %s29_s30 = sadd.s32 1, %s1431_s17  ;;  %s32_s4 = sadd.s32 1, %s1435_s18 }
  0x2e   : > { %p30_p1 = scmp.ge.s32.totalorder %s29_s30, 2  ;;  %s39_s5 = sadd.s32 1, %s1419_s14 }
  0x2f   : > { %p46_p2 = scmp.ne.s32.totalorder %s1419_s14, %s1415_s13  ;;  %p47_p4 = scmp.eq.s32.totalorder %s1439_s19, 0 }
  0x30   : > { %s2297_s30 = smov (%p30_p1, %s29_s30), 0  ;;  %s2299_s4 = smov (!%p30_p1, %s32_s4), %s1435_s18 }
  0x31   : > { %p2270_p6 = scmp.ne.s32.totalorder %s2265_s23, 0  ;;  %p34_p11 = scmp.ge.s32.totalorder %s2299_s4, 2 }
  0x32   : > { %p1118_p10 = scmp.lt.s32.totalorder %s1439_s19, 4  ;;  %p48_p12 = por %p47_p4, %p46_p2 }
  0x33   : > { %p1575_p8 = por %p2270_p6, %p46_p2  ;;  %s160_s28 = sand.u32 1, %s1419_s14  }
  0x34   : > { %s2301_s4 = smov (%p34_p11, %s2299_s4), 0  ;;  %s1046_s6 = sshll.u32 %s160_s28, 8 }
  0x35   : > { %s36_s7 = ssub.s32 %s1435_s18, %s2301_s4  ;;  %s1078_s8 = sshll.u32 %s1435_s18, 12 }
  0x36   : > { %p37_p13 = scmp.eq.s32.totalorder %s36_s7, 0  ;;  %s1589_s23 = scalar_lea.hbm %s2251_s0, %s1078_s8 }
  0x37   : > { %s164_s21 = scalar_lea.vmem [#allocation2], %s1046_s6  ;;  %p1598_p0 = pnand %p1118_p10, %p48_p12 }
  0x38   : > { %s171_s27 = sshll.u32 %s164_s21, 4  ;;  %s1602_s7 = scalar_lea.sflag [#allocation3], %s160_s28  ;;  %s1594_s27 = int_to_ptr.vmem [resolvable:$true] %s171_s27 }
  0x39   : > { %s1592_s11 = scalar_select %p37_p13, %s1419_s14, %s39_s5  }
  0x3a   : > { %s1307_s8 = scalar_lea.hbm %s1589_s23, 4096  ;;  %p1309_p5 = pneg %p1598_p0 }
  0x3b   : > { %p1308_p3 = scmp.ne.s32.totalorder %s1589_s23, %s1307_s8  ;;  %s1312_s9 = scalar_lea.hbm %s2251_s0, 8192 }
  0x3c   : > { %p1313_p1 = scmp.lt.u32.totalorder %s1589_s23, %s2251_s0  ;;  %p1314_p2 = scmp.lt.u32.totalorder %s1312_s9, %s1307_s8 }
  0x3d   : > { %p1310_p7 = pnand %p1309_p5, %p1308_p3  ;;  %p1316_p6 = scmp.lt.u32.totalorder %s1307_s8, %s1589_s23 }
  0x3e   : > { %p1315_p4 = por %p1314_p2, %p1313_p1 }
  0x3f   : > { %p1311_p9 = pneg %p1310_p7 }
  0x40   : > { %p1317_p11 = por %p1316_p6, %p1315_p4 }
  0x42   : > { %p1318_p10 = pnand %p1317_p11, %p1311_p9 }
  0x44   : > { %1321 = shalt.err (!%p1318_p10)
}
  0x45   : > { %s1322_s28 = scalar_lea.vmem %s1594_s27, 4096  ;;  %s1444_s5 = smov [#allocation2]  }
  0x46   : > { %p1323_p12 = scmp.ne.s32.totalorder %s1594_s27, %s1322_s28  ;;  %s1327_s6 = sshll.u32 %s1444_s5, 4  ;;  %s1328_s6 = int_to_ptr.vmem [resolvable:$false] %s1327_s6 }
  0x47   : > { %s1329_s10 = scalar_lea.vmem %s1328_s6, 8192  ;;  %p1330_p7 = scmp.lt.s32.totalorder %s1594_s27, %s1328_s6 }
  0x48   : > { %p1325_p13 = pnand %p1323_p12, %p1309_p5  ;;  %p1331_p1 = scmp.lt.s32.totalorder %s1329_s10, %s1322_s28 }
  0x4a   : > { %p1326_p3 = pneg %p1325_p13  ;;  %p1332_p2 = por %p1331_p1, %p1330_p7 }
  0x4c   : > { %p1333_p4 = pnand %p1332_p2, %p1326_p3 }
  0x4e   : > { %1336 = shalt.err (!%p1333_p4)
}
  0x4f   : > { %s2273_s8 = smov 8   ;;  %s2274_s9 = smov 128  }
  0x50   : > { %1112 = dma.hbm_to_vmem [thread:$0]  (!%p1598_p0), %s1589_s23, 4096, %s1594_s27, %s1602_s7, %s2274_s9, %s2274_s9, %s2273_s8  }
  0x51   : > { %p2275_p5 = scmp.ne.s32.totalorder %s2268_s26, 0 }
  0x53   : > { %183 = sbr.rel (%p2275_p5) target bundleno = 474 (0x1da), region = 32 }
  0x5a   : > { %s1636_s21 = sand.u32 1, %s1415_s13   ;;  %p2276_p9 = scmp.ne.s32.totalorder %s2266_s24, 0 }
  0x5b   : > { %s1050_s28 = sshll.u32 %s1636_s21, 8  ;;  %s186_s5 = scalar_lea.sflag [#allocation3], %s1636_s21 }
  0x5c   : > { %s1640_s6 = scalar_lea.vmem [#allocation2], %s1050_s28 }
  0x5d   : > { %1398 = dma.done.wait (%p2276_p9), %s186_s5, 4096  }
  0x5e   : > { %1400 = vsyncadd (%p2276_p9), %s186_s5, 4294963200  ;;  %p2277_p0 = scmp.ne.s32.totalorder %s2264_s22, 0 }
  0x60   : > { %1402 = dma.done.wait (%p2277_p0), [#allocation6], 4096  }
  0x61   : > { %1404 = vsyncadd (%p2277_p0), [#allocation6], 4294963200  ;;  %s1650_s26 = scalar_lea.vmem [#allocation7], %s1050_s28  ;;  %p1053_p6 = scmp.ne.s32.totalorder %s1423_s15, 0 }
  0x62   : > { %v223_v0 = vld [vmem:[%s1640_s6] sm:$0xff] (!%p1053_p6)  ;;  %v224_v1 = vld [vmem:[%s1640_s6 + $0x8] sm:$0xff] (!%p1053_p6)  ;;  %v225_v2 = vld [vmem:[%s1640_s6 + $0x10] sm:$0xff] (!%p1053_p6) }
  0x63   : > { %222 = sbr.rel (%p1053_p6) target bundleno = 115 (0x73), region = 44  ;;  %255 = vst [vmem:[%s1650_s26] sm:$0xff] (!%p1053_p6), %v223_v0  ;;  %256 = vst [vmem:[%s1650_s26 + $0x8] sm:$0xff] (!%p1053_p6), %v224_v1  ;;  %v226_v3 = vld [vmem:[%s1640_s6 + $0x18] sm:$0xff] (!%p1053_p6)  ;;  %v227_v4 = vld [vmem:[%s1640_s6 + $0x20] sm:$0xff] (!%p1053_p6) }
  0x64   : > { %257 = vst [vmem:[%s1650_s26 + $0x10] sm:$0xff] (!%p1053_p6), %v225_v2  ;;  %v228_v5 = vld [vmem:[%s1640_s6 + $0x28] sm:$0xff] (!%p1053_p6)  ;;  %258 = vst [vmem:[%s1650_s26 + $0x18] sm:$0xff] (!%p1053_p6), %v226_v3  ;;  %v229_v6 = vld [vmem:[%s1640_s6 + $0x30] sm:$0xff] (!%p1053_p6) }
  0x65   : > { %259 = vst [vmem:[%s1650_s26 + $0x20] sm:$0xff] (!%p1053_p6), %v227_v4  ;;  %260 = vst [vmem:[%s1650_s26 + $0x28] sm:$0xff] (!%p1053_p6), %v228_v5  ;;  %v230_v7 = vld [vmem:[%s1640_s6 + $0x38] sm:$0xff] (!%p1053_p6)  ;;  %v231_v8 = vld [vmem:[%s1640_s6 + $0x40] sm:$0xff] (!%p1053_p6) }
  0x66   : > { %261 = vst [vmem:[%s1650_s26 + $0x30] sm:$0xff] (!%p1053_p6), %v229_v6  ;;  %262 = vst [vmem:[%s1650_s26 + $0x38] sm:$0xff] (!%p1053_p6), %v230_v7  ;;  %v232_v9 = vld [vmem:[%s1640_s6 + $0x48] sm:$0xff] (!%p1053_p6)  ;;  %v233_v10 = vld [vmem:[%s1640_s6 + $0x50] sm:$0xff] (!%p1053_p6) }
  0x67   : > { %263 = vst [vmem:[%s1650_s26 + $0x40] sm:$0xff] (!%p1053_p6), %v231_v8  ;;  %v234_v11 = vld [vmem:[%s1640_s6 + $0x58] sm:$0xff] (!%p1053_p6)  ;;  %264 = vst [vmem:[%s1650_s26 + $0x48] sm:$0xff] (!%p1053_p6), %v232_v9  ;;  %v235_v12 = vld [vmem:[%s1640_s6 + $0x60] sm:$0xff] (!%p1053_p6) }
  0x68   : > { %265 = vst [vmem:[%s1650_s26 + $0x50] sm:$0xff] (!%p1053_p6), %v233_v10  ;;  %266 = vst [vmem:[%s1650_s26 + $0x58] sm:$0xff] (!%p1053_p6), %v234_v11  ;;  %v236_v13 = vld [vmem:[%s1640_s6 + $0x68] sm:$0xff] (!%p1053_p6)  ;;  %v237_v14 = vld [vmem:[%s1640_s6 + $0x70] sm:$0xff] (!%p1053_p6) }
  0x69   : > { %267 = vst [vmem:[%s1650_s26 + $0x60] sm:$0xff] (!%p1053_p6), %v235_v12  ;;  %268 = vst [vmem:[%s1650_s26 + $0x68] sm:$0xff] (!%p1053_p6), %v236_v13  ;;  %v238_v15 = vld [vmem:[%s1640_s6 + $0x78] sm:$0xff] (!%p1053_p6)  ;;  %v239_v16 = vld [vmem:[%s1640_s6 + $0x80] sm:$0xff] (!%p1053_p6) }
  0x6a   : > { %269 = vst [vmem:[%s1650_s26 + $0x70] sm:$0xff] %v237_v14  ;;  %v240_v17 = vld [vmem:[%s1640_s6 + $0x88] sm:$0xff]  ;;  %270 = vst [vmem:[%s1650_s26 + $0x78] sm:$0xff] %v238_v15  ;;  %v241_v18 = vld [vmem:[%s1640_s6 + $0x90] sm:$0xff] }
  0x6b   : > { %271 = vst [vmem:[%s1650_s26 + $0x80] sm:$0xff] %v239_v16  ;;  %272 = vst [vmem:[%s1650_s26 + $0x88] sm:$0xff] %v240_v17  ;;  %v242_v19 = vld [vmem:[%s1640_s6 + $0x98] sm:$0xff]  ;;  %v243_v20 = vld [vmem:[%s1640_s6 + $0xa0] sm:$0xff] }
  0x6c   : > { %273 = vst [vmem:[%s1650_s26 + $0x90] sm:$0xff] %v241_v18  ;;  %274 = vst [vmem:[%s1650_s26 + $0x98] sm:$0xff] %v242_v19  ;;  %v244_v21 = vld [vmem:[%s1640_s6 + $0xa8] sm:$0xff]  ;;  %v245_v22 = vld [vmem:[%s1640_s6 + $0xb0] sm:$0xff] }
  0x6d   : > { %275 = vst [vmem:[%s1650_s26 + $0xa0] sm:$0xff] %v243_v20  ;;  %v246_v23 = vld [vmem:[%s1640_s6 + $0xb8] sm:$0xff]  ;;  %276 = vst [vmem:[%s1650_s26 + $0xa8] sm:$0xff] %v244_v21  ;;  %v247_v24 = vld [vmem:[%s1640_s6 + $0xc0] sm:$0xff] }
  0x6e   : > { %277 = vst [vmem:[%s1650_s26 + $0xb0] sm:$0xff] %v245_v22  ;;  %278 = vst [vmem:[%s1650_s26 + $0xb8] sm:$0xff] %v246_v23  ;;  %v248_v25 = vld [vmem:[%s1640_s6 + $0xc8] sm:$0xff]  ;;  %v249_v26 = vld [vmem:[%s1640_s6 + $0xd0] sm:$0xff] }
  0x6f   : > { %279 = vst [vmem:[%s1650_s26 + $0xc0] sm:$0xff] %v247_v24  ;;  %280 = vst [vmem:[%s1650_s26 + $0xc8] sm:$0xff] %v248_v25  ;;  %v250_v27 = vld [vmem:[%s1640_s6 + $0xd8] sm:$0xff]  ;;  %v251_v28 = vld [vmem:[%s1640_s6 + $0xe0] sm:$0xff] }
  0x70   : > { %281 = vst [vmem:[%s1650_s26 + $0xd0] sm:$0xff] %v249_v26  ;;  %v252_v29 = vld [vmem:[%s1640_s6 + $0xe8] sm:$0xff]  ;;  %282 = vst [vmem:[%s1650_s26 + $0xd8] sm:$0xff] %v250_v27  ;;  %v253_v30 = vld [vmem:[%s1640_s6 + $0xf0] sm:$0xff] }
  0x71   : > { %283 = vst [vmem:[%s1650_s26 + $0xe0] sm:$0xff] %v251_v28  ;;  %284 = vst [vmem:[%s1650_s26 + $0xe8] sm:$0xff] %v252_v29  ;;  %v254_v31 = vld [vmem:[%s1640_s6 + $0xf8] sm:$0xff] }
  0x72   : > { %285 = vst [vmem:[%s1650_s26 + $0xf0] sm:$0xff] %v253_v30  ;;  %286 = vst [vmem:[%s1650_s26 + $0xf8] sm:$0xff] %v254_v31 }
  0x73 PF: > { %s1079_s22 = sshll.u32 %s1423_s15, 7  ;;  %v1445_v32 = vmov 0   ;;  %v1738_v48 = vld [vmem:[%s1650_s26] sm:$0xff]  ;;  %v1741_v49 = vld [vmem:[%s1650_s26 + $0x8] sm:$0xff]  ;;  %v1763_v57 = vld [vmem:[%s1650_s26 + $0x90] sm:$0xff]  ;;  %s1056_s20 = sshll.u32 %s1423_s15, 1 }
  0x74   : > { %480 = vmatprep.mubr.bf16.mxu0 %v1445_v32  ;;  %560 = vmatprep.mubr.bf16.mxu1 %v1445_v32  ;;  %s1720_s24 = scalar_lea.vmem [#allocation5], %s1079_s22  ;;  %v1745_v51 = vld [vmem:[%s1650_s26 + $0x80] sm:$0xff]  ;;  %v1748_v52 = vld [vmem:[%s1650_s26 + $0x88] sm:$0xff]  ;;  %v319_v53 = vpack.c.bf16 %v1741_v49, %v1738_v48  ;;  %v1755_v55 = vld [vmem:[%s1650_s26 + $0x10] sm:$0xff]  ;;  %s355_s7 = scalar_lea.vmem %s2253_s2, %s1056_s20 }
  0x75   : > { %v1191_v33 = vld [vmem:[%s1720_s24 + $0x4] ss:$8 sps:$4 sm:$0xff]   ;;  %v1193_v34 = vld [vmem:[%s1720_s24] ss:$8 sps:$4 sm:$0xff]   ;;  %v1194_v35 = vld [vmem:[%s1720_s24 + $0x14] ss:$8 sps:$4 sm:$0xff]   ;;  %v327_v54 = vpack.c.bf16 %v1748_v52, %v1745_v51 }
  0x76   : > { %448 = vmatprep.subr.bf16.mxu0 %v1191_v33  ;;  %1081 = vmatprep.subr.bf16.mxu1 %v1191_v33  ;;  %v1196_v36 = vld [vmem:[%s1720_s24 + $0x10] ss:$8 sps:$4 sm:$0xff]   ;;  %v1197_v37 = vld [vmem:[%s1720_s24 + $0x24] ss:$8 sps:$4 sm:$0xff]   ;;  %v1199_v38 = vld [vmem:[%s1720_s24 + $0x20] ss:$8 sps:$4 sm:$0xff]  }
  0x77   : > { %449 = vmatpush1.bf16.msra.mxu0 %v1193_v34  ;;  %1089 = vmatpush1.bf16.msra.mxu1 %v1193_v34  ;;  %v1200_v39 = vld [vmem:[%s1720_s24 + $0x34] ss:$8 sps:$4 sm:$0xff]   ;;  %v1202_v40 = vld [vmem:[%s1720_s24 + $0x30] ss:$8 sps:$4 sm:$0xff]   ;;  %v1203_v41 = vld [vmem:[%s1720_s24 + $0x44] ss:$8 sps:$4 sm:$0xff]   ;;  %v358_v34 = vlaneseq }
  0x78   : > { %450 = vmatprep.subr.bf16.mxu0 %v1194_v35  ;;  %1082 = vmatprep.subr.bf16.mxu1 %v1194_v35  ;;  %v1205_v42 = vld [vmem:[%s1720_s24 + $0x40] ss:$8 sps:$4 sm:$0xff]   ;;  %v1206_v43 = vld [vmem:[%s1720_s24 + $0x54] ss:$8 sps:$4 sm:$0xff]   ;;  %v1208_v44 = vld [vmem:[%s1720_s24 + $0x50] ss:$8 sps:$4 sm:$0xff]  }
  0x79   : > { %v1209_v45 = vld [vmem:[%s1720_s24 + $0x64] ss:$8 sps:$4 sm:$0xff]   ;;  %v1211_v46 = vld [vmem:[%s1720_s24 + $0x60] ss:$8 sps:$4 sm:$0xff]   ;;  %v1212_v47 = vld [vmem:[%s1720_s24 + $0x74] ss:$8 sps:$4 sm:$0xff]  }
  0x7a   : > { %v1214_v50 = vld [vmem:[%s1720_s24 + $0x70] ss:$8 sps:$4 sm:$0xff]   ;;  %v1773_v61 = vld [vmem:[%s1650_s26 + $0x20] sm:$0xff]  ;;  %v1778_v62 = vld [vmem:[%s1650_s26 + $0x28] sm:$0xff]  ;;  %v359_v35 = vshrl.u32 %v358_v34, 7  ;;  %s1080_s15 = sshll.u32 %s1427_s16, 12 }
  0x7b   : > { %451 = vmatpush1.bf16.msra.mxu0 %v1196_v36  ;;  %1090 = vmatpush1.bf16.msra.mxu1 %v1196_v36  ;;  %v1760_v56 = vld [vmem:[%s1650_s26 + $0x18] sm:$0xff]  ;;  %v1781_v63 = vld [vmem:[%s1650_s26 + $0xa0] sm:$0xff]  ;;  %v1784_v0 = vld [vmem:[%s1650_s26 + $0xa8] sm:$0xff]  ;;  %v321_v1 = vpack.c.bf16 %v1778_v62, %v1773_v61  ;;  %s943_s10 = sshll.u32 %s1650_s26, 4  ;;  %s2193_s28 = scalar_lea.hbm %s2254_s3, %s1080_s15  ;;  %s2195_s10 = int_to_ptr.vmem [resolvable:$true] %s943_s10 }
  0x7c   : > { %452 = vmatprep.subr.bf16.mxu0 %v1197_v37  ;;  %1083 = vmatprep.subr.bf16.mxu1 %v1197_v37  ;;  %v1766_v58 = vld [vmem:[%s1650_s26 + $0x98] sm:$0xff]  ;;  %v320_v59 = vpack.c.bf16 %v1760_v56, %v1755_v55  ;;  %v329_v2 = vpack.c.bf16 %v1784_v0, %v1781_v63  ;;  %v1791_v3 = vld [vmem:[%s1650_s26 + $0x30] sm:$0xff]  ;;  %v1809_v9 = vld [vmem:[%s1650_s26 + $0x40] sm:$0xff]  ;;  %s930_s5 = scalar_lea.sflag [#allocation4], %s1636_s21  ;;  %s1337_s16 = scalar_lea.vmem %s2195_s10, 4096 }
  0x7d   : > { %v328_v60 = vpack.c.bf16 %v1766_v58, %v1763_v57  ;;  %v1796_v4 = vld [vmem:[%s1650_s26 + $0x38] sm:$0xff]  ;;  %v1799_v5 = vld [vmem:[%s1650_s26 + $0xb0] sm:$0xff]  ;;  %v1814_v10 = vld [vmem:[%s1650_s26 + $0x48] sm:$0xff]  ;;  %p1338_p11 = scmp.ne.s32.totalorder %s2195_s10, %s1337_s16  ;;  %s1446_s6 = smov [#allocation7]  }
  0x7e   : > { %v1802_v6 = vld [vmem:[%s1650_s26 + $0xb8] sm:$0xff]  ;;  %v322_v7 = vpack.c.bf16 %v1796_v4, %v1791_v3  ;;  %v1817_v11 = vld [vmem:[%s1650_s26 + $0xc0] sm:$0xff]  ;;  %v1820_v12 = vld [vmem:[%s1650_s26 + $0xc8] sm:$0xff]  ;;  %v323_v13 = vpack.c.bf16 %v1814_v10, %v1809_v9  ;;  %s1341_s22 = sshll.u32 %s1446_s6, 4  ;;  %s1342_s22 = int_to_ptr.vmem [resolvable:$false] %s1341_s22 }
  0x7f   : > { %453 = vmatpush1.bf16.msra.mxu0 %v1199_v38  ;;  %1091 = vmatpush1.bf16.msra.mxu1 %v1199_v38  ;;  %v330_v8 = vpack.c.bf16 %v1802_v6, %v1799_v5  ;;  %v331_v14 = vpack.c.bf16 %v1820_v12, %v1817_v11  ;;  %v1827_v15 = vld [vmem:[%s1650_s26 + $0x50] sm:$0xff]  ;;  %v1832_v16 = vld [vmem:[%s1650_s26 + $0x58] sm:$0xff]  ;;  %v1845_v21 = vld [vmem:[%s1650_s26 + $0x60] sm:$0xff]  ;;  %v360_v38 = vsub.s32 0, %v359_v35  ;;  %p1339_p10 = pnand %p1338_p11, %p1575_p8  ;;  %s1343_s24 = scalar_lea.vmem %s1342_s22, 8192 }
  0x80   : > { %454 = vmatprep.subr.bf16.mxu0 %v1200_v39  ;;  %1084 = vmatprep.subr.bf16.mxu1 %v1200_v39  ;;  %v1835_v17 = vld [vmem:[%s1650_s26 + $0xd0] sm:$0xff]  ;;  %v1838_v18 = vld [vmem:[%s1650_s26 + $0xd8] sm:$0xff]  ;;  %v324_v19 = vpack.c.bf16 %v1832_v16, %v1827_v15  ;;  %v1850_v22 = vld [vmem:[%s1650_s26 + $0x68] sm:$0xff]  ;;  %p1344_p13 = scmp.lt.s32.totalorder %s2195_s10, %s1342_s22  ;;  %p1345_p3 = scmp.lt.s32.totalorder %s1343_s24, %s1337_s16 }
  0x81   : > { %v332_v20 = vpack.c.bf16 %v1838_v18, %v1835_v17  ;;  %v1853_v23 = vld [vmem:[%s1650_s26 + $0xe0] sm:$0xff]  ;;  %v1856_v24 = vld [vmem:[%s1650_s26 + $0xe8] sm:$0xff]  ;;  %v325_v25 = vpack.c.bf16 %v1850_v22, %v1845_v21  ;;  %v1863_v27 = vld [vmem:[%s1650_s26 + $0x70] sm:$0xff]  ;;  %p1340_p12 = pneg %p1339_p10 }
  0x82   : > { %v333_v26 = vpack.c.bf16 %v1856_v24, %v1853_v23  ;;  %v1868_v28 = vld [vmem:[%s1650_s26 + $0x78] sm:$0xff]  ;;  %v1871_v29 = vld [vmem:[%s1650_s26 + $0xf0] sm:$0xff]  ;;  %v356_v36 = vld [vmem:[%s355_s7] sm:$0x3]  ;;  %p1346_p7 = por %p1345_p3, %p1344_p13 }
  0x83   : > { %455 = vmatpush1.bf16.msra.mxu0 %v1202_v40  ;;  %1092 = vmatpush1.bf16.msra.mxu1 %v1202_v40  ;;  %2278 = vst [vmem:[#allocation11_spill] sm:$0xff] %v1868_v28  ;;  %2279 = vst [vmem:[#allocation12_spill] sm:$0xff] %v1871_v29  ;;  %v1874_v30 = vld [vmem:[%s1650_s26 + $0xf8] sm:$0xff]  ;;  %v326_v31 = vpack.c.bf16 %v1868_v28, %v1863_v27 }
  0x84   : > { %456 = vmatprep.subr.bf16.mxu0 %v1203_v41  ;;  %1085 = vmatprep.subr.bf16.mxu1 %v1203_v41  ;;  %2280 = vst [vmem:[#allocation13_spill] sm:$0xff] %v1874_v30  ;;  %v334_v33 = vpack.c.bf16 %v1874_v30, %v1871_v29  ;;  %p1347_p1 = pnand %p1346_p7, %p1340_p12 }
  0x87   : > { %457 = vmatpush1.bf16.msra.mxu0 %v1205_v42  ;;  %1093 = vmatpush1.bf16.msra.mxu1 %v1205_v42 }
  0x88   : > { %458 = vmatprep.subr.bf16.mxu0 %v1206_v43  ;;  %1086 = vmatprep.subr.bf16.mxu1 %v1206_v43 }
  0x8b   : > { %459 = vmatpush1.bf16.msra.mxu0 %v1208_v44  ;;  %1094 = vmatpush1.bf16.msra.mxu1 %v1208_v44 }
  0x8c   : > { %460 = vmatprep.subr.bf16.mxu0 %v1209_v45  ;;  %1087 = vmatprep.subr.bf16.mxu1 %v1209_v45 }
  0x8f   : > { %461 = vmatpush1.bf16.msra.mxu0 %v1211_v46  ;;  %1095 = vmatpush1.bf16.msra.mxu1 %v1211_v46 }
  0x90   : > { %462 = vmatprep.subr.bf16.mxu0 %v1212_v47  ;;  %1088 = vmatprep.subr.bf16.mxu1 %v1212_v47  ;;  %v1888_v47 = vrot.slane %v356_v36, %v360_v38 }
  0x93   : > { %463 = vmatpush1.bf16.msra.mxu0 %v1214_v50  ;;  %1096 = vmatpush1.bf16.msra.mxu1 %v1214_v50 }
  0x96   : > { %481 = vmatmul.mubr.bf16.vlgmr.msra.gmra.mrb[0].mxu0 %v319_v53  ;;  %561 = vmatmul.mubr.bf16.vlgmr.msra.gmra.mrb[0].mxu1 %v327_v54 }
  0x97   : > { %490 = vmatprep.mubr.bf16.mxu0 %v1445_v32  ;;  %570 = vmatprep.mubr.bf16.mxu1 %v1445_v32 }
  0x9e   : > { %491 = vmatmul.mubr.bf16.gmra.mrb[4].mxu0 %v320_v59  ;;  %571 = vmatmul.mubr.bf16.gmra.mrb[4].mxu1 %v328_v60 }
  0x9f   : > { %500 = vmatprep.mubr.bf16.mxu0 %v1445_v32  ;;  %580 = vmatprep.mubr.bf16.mxu1 %v1445_v32 }
  0xa6   : > { %501 = vmatmul.mubr.bf16.gmra.mrb[8].mxu0 %v321_v1  ;;  %581 = vmatmul.mubr.bf16.gmra.mrb[8].mxu1 %v329_v2 }
  0xa7   : > { %510 = vmatprep.mubr.bf16.mxu0 %v1445_v32  ;;  %590 = vmatprep.mubr.bf16.mxu1 %v1445_v32 }
  0xae   : > { %511 = vmatmul.mubr.bf16.gmra.mrb[12].mxu0 %v322_v7  ;;  %591 = vmatmul.mubr.bf16.gmra.mrb[12].mxu1 %v330_v8 }
  0xaf   : > { %520 = vmatprep.mubr.bf16.mxu0 %v1445_v32  ;;  %600 = vmatprep.mubr.bf16.mxu1 %v1445_v32 }
  0xb6   : > { %521 = vmatmul.mubr.bf16.gmra.mrb[16].mxu0 %v323_v13  ;;  %601 = vmatmul.mubr.bf16.gmra.mrb[16].mxu1 %v331_v14 }
  0xb7   : > { %530 = vmatprep.mubr.bf16.mxu0 %v1445_v32  ;;  %610 = vmatprep.mubr.bf16.mxu1 %v1445_v32 }
  0xbe   : > { %531 = vmatmul.mubr.bf16.gmra.mrb[20].mxu0 %v324_v19  ;;  %611 = vmatmul.mubr.bf16.gmra.mrb[20].mxu1 %v332_v20 }
  0xbf   : > { %540 = vmatprep.mubr.bf16.mxu0 %v1445_v32  ;;  %620 = vmatprep.mubr.bf16.mxu1 %v1445_v32 }
  0xc6   : > { %541 = vmatmul.mubr.bf16.gmra.mrb[24].mxu0 %v325_v25  ;;  %621 = vmatmul.mubr.bf16.gmra.mrb[24].mxu1 %v333_v26 }
  0xc7   : > { %550 = vmatprep.mubr.bf16.mxu0 %v1445_v32  ;;  %630 = vmatprep.mubr.bf16.mxu1 %v1445_v32  ;;  %v364_v32 = vsub.s32 1, %v359_v35 }
  0xc9   : > { %v1884_v37 = vrot.slane %v356_v36, %v364_v32 }
  0xce   : > { %551 = vmatmul.mubr.bf16.gmra.mrb[28].mxu0 %v326_v31  ;;  %631 = vmatmul.mubr.bf16.gmra.mrb[28].mxu1 %v334_v33 }
 0x169   : > { %v482_v39 = vpop.f32.mrb[0].mxu0  ;;  %v562_v40 = vpop.f32.mrb[0].mxu1 }
 0x16a   : > { %v484_v41 = vpop.f32.mrb[1].mxu0  ;;  %v564_v42 = vpop.f32.mrb[1].mxu1  ;;  %v1893_v8 = vadd.f32 %v482_v39, %v1888_v47  ;;  %v1896_v13 = vadd.f32 %v562_v40, %v1888_v47 }
 0x16b   : > { %v485_v43 = vadd.f32 %v484_v41, %v1884_v37  ;;  %v565_v44 = vadd.f32 %v564_v42, %v1884_v37  ;;  %v486_v45 = vpop.f32.mrb[2].mxu0  ;;  %v566_v46 = vpop.f32.mrb[2].mxu1 }
 0x16c   : > { %v488_v50 = vpop.f32.mrb[3].mxu0  ;;  %v568_v53 = vpop.f32.mrb[3].mxu1  ;;  %v1899_v20 = vadd.f32 %v486_v45, %v1888_v47  ;;  %v641_v32 = vmax.f32 %v1893_v8, 0.0  ;;  %v657_v36 = vmax.f32 %v1896_v13, 0.0  ;;  %v1906_v38 = vadd.f32 %v566_v46, %v1888_v47 }
 0x16d   : > { %v673_v54 = vmul.f32 0.5, %v485_v43  ;;  %v689_v59 = vmul.f32 0.5, %v565_v44  ;;  %v489_v60 = vadd.f32 %v488_v50, %v1884_v37  ;;  %v569_v1 = vadd.f32 %v568_v53, %v1884_v37 }
 0x16e   : > { %v642_v45 = vmax.f32 %v1899_v20, 0.0 }
 0x16f   : > { %1215 = vtanh.f32 %v673_v54  ;;  %v674_v2 = vmul.f32 0.5, %v489_v60  ;;  %v690_v7 = vmul.f32 0.5, %v569_v1  ;;  %v801_v60 = vsub.f32 %v1738_v48, %v641_v32 }
 0x170   : > { %1217 = vtanh.f32 %v689_v59  ;;  %v817_v1 = vsub.f32 %v1745_v51, %v657_v36  ;;  %v802_v20 = vsub.f32 %v1741_v49, %v642_v45 }
 0x171   : > { %1219 = vtanh.f32 %v674_v2  ;;  %v492_v14 = vpop.f32.mrb[4].mxu0  ;;  %v572_v19 = vpop.f32.mrb[4].mxu1  ;;  %v658_v2 = vmax.f32 %v1906_v38, 0.0 }
 0x172   : > { %1221 = vtanh.f32 %v690_v7  ;;  %v494_v25 = vpop.f32.mrb[5].mxu0  ;;  %v574_v26 = vpop.f32.mrb[5].mxu1  ;;  %v1912_v50 = vadd.f32 %v492_v14, %v1888_v47  ;;  %v1915_v53 = vadd.f32 %v572_v19, %v1888_v47 }
 0x173   : > { %v495_v31 = vadd.f32 %v494_v25, %v1884_v37  ;;  %v575_v33 = vadd.f32 %v574_v26, %v1884_v37  ;;  %v496_v34 = vpop.f32.mrb[6].mxu0  ;;  %v576_v35 = vpop.f32.mrb[6].mxu1  ;;  %v818_v19 = vsub.f32 %v1748_v52, %v658_v2 }
 0x174   : > { %v498_v39 = vpop.f32.mrb[7].mxu0  ;;  %v578_v40 = vpop.f32.mrb[7].mxu1  ;;  %v2281_v28 = vmax.f32 %v1912_v50, 0.0 }
 0x175   : > { %v675_v41 = vmul.f32 0.5, %v495_v31  ;;  %v691_v42 = vmul.f32 0.5, %v575_v33  ;;  %v499_v43 = vadd.f32 %v498_v39, %v1884_v37  ;;  %v579_v44 = vadd.f32 %v578_v40, %v1884_v37 }
 0x177   : > { %1223 = vtanh.f32 %v675_v41  ;;  %v676_v54 = vmul.f32 0.5, %v499_v43  ;;  %v692_v46 = vmul.f32 0.5, %v579_v44  ;;  %v1930_v43 = vadd.f32 %v496_v34, %v1888_v47 }
 0x178   : > { %1225 = vtanh.f32 %v691_v42  ;;  %v1933_v44 = vadd.f32 %v576_v35, %v1888_v47  ;;  %v2282_v35 = vmax.f32 %v1915_v53, 0.0 }
 0x179   : > { %v1216_v59 = vpop.eup %1215  ;;  %1227 = vtanh.f32 %v676_v54  ;;  %v502_v7 = vpop.f32.mrb[8].mxu0 }
 0x17a   : > { %v582_v8 = vpop.f32.mrb[8].mxu1  ;;  %v1218_v13 = vpop.eup %1217  ;;  %v737_v14 = vadd.f32 1.0, %v1216_v59  ;;  %1229 = vtanh.f32 %v692_v46  ;;  %v819_v29 = vsub.f32 %v1763_v57, %v2282_v35 }
 0x17b   : > { %v504_v25 = vpop.f32.mrb[9].mxu0  ;;  %v584_v26 = vpop.f32.mrb[9].mxu1  ;;  %v753_v33 = vadd.f32 1.0, %v1218_v13 }
 0x17c   : > { %v1220_v31 = vpop.eup %1219  ;;  %v505_v51 = vadd.f32 %v504_v25, %v1884_v37  ;;  %v585_v38 = vadd.f32 %v584_v26, %v1884_v37  ;;  %v1925_v39 = vpop.f32.mrb[10].mxu0  ;;  %v769_v42 = vmul.f32 0.5, %v737_v14  ;;  %v803_v14 = vsub.f32 %v1755_v55, %v2281_v28 }
 0x17d   : > { %v1927_v40 = vpop.f32.mrb[10].mxu1  ;;  %v1222_v41 = vpop.eup %1221  ;;  %v738_v49 = vadd.f32 1.0, %v1220_v31  ;;  %v785_v59 = vmul.f32 0.5, %v753_v33 }
 0x17e   : > { %v508_v54 = vpop.f32.mrb[11].mxu0  ;;  %v588_v46 = vpop.f32.mrb[11].mxu1  ;;  %v754_v13 = vadd.f32 1.0, %v1222_v41  ;;  %v677_v25 = vmul.f32 0.5, %v505_v51  ;;  %v693_v48 = vmul.f32 0.5, %v585_v38  ;;  %v833_v26 = vmul.f32 %v801_v60, %v769_v42 }
 0x17f   : > { %v770_v30 = vmul.f32 0.5, %v738_v49  ;;  %v849_v31 = vmul.f32 %v817_v1, %v785_v59  ;;  %v644_v51 = vmax.f32 %v1930_v43, 0.0  ;;  %v660_v42 = vmax.f32 %v1933_v44, 0.0 }
 0x180   : > { %v786_v34 = vmul.f32 0.5, %v754_v13  ;;  %1231 = vtanh.f32 %v677_v25  ;;  %v865_v33 = vadd.f32 %v833_v26, %v641_v32  ;;  %v509_v55 = vadd.f32 %v508_v54, %v1884_v37 }
 0x181   : > { %v834_v41 = vmul.f32 %v802_v20, %v770_v30  ;;  %1233 = vtanh.f32 %v693_v48  ;;  %v1224_v60 = vpop.eup %1223  ;;  %v881_v52 = vadd.f32 %v849_v31, %v657_v36  ;;  %v512_v28 = vpop.f32.mrb[12].mxu0  ;;  %v1947_v30 = vadd.f32 %v502_v7, %v1888_v47 }
 0x182   : > { %v850_v38 = vmul.f32 %v818_v19, %v786_v34  ;;  %v592_v1 = vpop.f32.mrb[12].mxu1  ;;  %v1226_v49 = vpop.eup %1225  ;;  %897 = vst [vmem:[%s1650_s26] sm:$0xff] %v865_v33  ;;  %v739_v59 = vadd.f32 1.0, %v1224_v60  ;;  %v589_v32 = vadd.f32 %v588_v46, %v1884_v37  ;;  %v1952_v44 = vadd.f32 %v582_v8, %v1888_v47 }
 0x183   : > { %v866_v57 = vadd.f32 %v834_v41, %v642_v45  ;;  %v514_v20 = vpop.f32.mrb[13].mxu0  ;;  %v594_v48 = vpop.f32.mrb[13].mxu1  ;;  %913 = vst [vmem:[%s1650_s26 + $0x80] sm:$0xff] %v881_v52  ;;  %v755_v43 = vadd.f32 1.0, %v1226_v49  ;;  %v678_v54 = vmul.f32 0.5, %v509_v55  ;;  %v804_v46 = vsub.f32 %v1760_v56, %v644_v51 }
 0x184   : > { %v1228_v36 = vpop.eup %1227  ;;  %v882_v19 = vadd.f32 %v850_v38, %v658_v2  ;;  %v1954_v13 = vpop.f32.mrb[14].mxu0  ;;  %v771_v7 = vmul.f32 0.5, %v739_v59  ;;  %v694_v31 = vmul.f32 0.5, %v589_v32  ;;  %v820_v33 = vsub.f32 %v1766_v58, %v660_v42 }
 0x185   : > { %v1956_v45 = vpop.f32.mrb[14].mxu1  ;;  %v1230_v25 = vpop.eup %1229  ;;  %898 = vst [vmem:[%s1650_s26 + $0x8] sm:$0xff] %v866_v57  ;;  %v740_v26 = vadd.f32 1.0, %v1228_v36  ;;  %v787_v2 = vmul.f32 0.5, %v755_v43  ;;  %1235 = vtanh.f32 %v678_v54  ;;  %v645_v52 = vmax.f32 %v1947_v30, 0.0 }
 0x186   : > { %v518_v34 = vpop.f32.mrb[15].mxu0  ;;  %v598_v35 = vpop.f32.mrb[15].mxu1  ;;  %914 = vst [vmem:[%s1650_s26 + $0x88] sm:$0xff] %v882_v19  ;;  %v756_v8 = vadd.f32 1.0, %v1230_v25  ;;  %v835_v41 = vmul.f32 %v803_v14, %v771_v7  ;;  %1237 = vtanh.f32 %v694_v31  ;;  %v661_v56 = vmax.f32 %v1952_v44, 0.0 }
 0x187   : > { %v772_v60 = vmul.f32 0.5, %v740_v26  ;;  %v851_v38 = vmul.f32 %v819_v29, %v787_v2  ;;  %v515_v49 = vadd.f32 %v514_v20, %v1884_v37  ;;  %v2283_v57 = vmax.f32 %v1912_v50, 0.0 }
 0x188   : > { %v788_v55 = vmul.f32 0.5, %v756_v8  ;;  %v1969_v58 = vadd.f32 %v1925_v39, %v1888_v47  ;;  %v595_v14 = vadd.f32 %v594_v48, %v1884_v37  ;;  %v2284_v29 = vmax.f32 %v1915_v53, 0.0 }
 0x189   : > { %v867_v59 = vadd.f32 %v835_v41, %v2283_v57  ;;  %v836_v32 = vmul.f32 %v804_v46, %v772_v60  ;;  %v1976_v43 = vadd.f32 %v1927_v40, %v1888_v47  ;;  %v679_v20 = vmul.f32 0.5, %v515_v49  ;;  %v1978_v50 = vpop.f32.mrb[16].mxu0  ;;  %v1980_v44 = vpop.f32.mrb[16].mxu1 }
 0x18a   : > { %v1232_v30 = vpop.eup %1231  ;;  %v883_v36 = vadd.f32 %v851_v38, %v2284_v29  ;;  %v852_v19 = vmul.f32 %v820_v33, %v788_v55  ;;  %v1984_v25 = vadd.f32 %v512_v28, %v1888_v47  ;;  %v695_v53 = vmul.f32 0.5, %v595_v14  ;;  %v524_v7 = vpop.f32.mrb[17].mxu0 }
 0x18b   : > { %v1234_v39 = vpop.eup %1233  ;;  %899 = vst [vmem:[%s1650_s26 + $0x10] sm:$0xff] %v867_v59  ;;  %v868_v54 = vadd.f32 %v836_v32, %v644_v51  ;;  %v741_v48 = vadd.f32 1.0, %v1232_v30  ;;  %v604_v46 = vpop.f32.mrb[17].mxu1  ;;  %v1988_v31 = vadd.f32 %v592_v1, %v1888_v47  ;;  %1239 = vtanh.f32 %v679_v20 }
 0x18c   : > { %915 = vst [vmem:[%s1650_s26 + $0x90] sm:$0xff] %v883_v36  ;;  %v884_v40 = vadd.f32 %v852_v19, %v660_v42  ;;  %v757_v26 = vadd.f32 1.0, %v1234_v39  ;;  %v1990_v2 = vpop.f32.mrb[18].mxu0  ;;  %v1992_v33 = vpop.f32.mrb[18].mxu1  ;;  %v805_v51 = vsub.f32 %v1773_v61, %v645_v52  ;;  %1241 = vtanh.f32 %v695_v53 }
 0x18d   : > { %900 = vst [vmem:[%s1650_s26 + $0x18] sm:$0xff] %v868_v54  ;;  %v773_v28 = vmul.f32 0.5, %v741_v48  ;;  %v519_v8 = vadd.f32 %v518_v34, %v1884_v37  ;;  %v528_v41 = vpop.f32.mrb[19].mxu0  ;;  %v608_v60 = vpop.f32.mrb[19].mxu1  ;;  %v821_v42 = vsub.f32 %v1781_v63, %v661_v56  ;;  %v646_v1 = vmax.f32 %v1969_v58, 0.0 }
 0x18e   : > { %916 = vst [vmem:[%s1650_s26 + $0x98] sm:$0xff] %v884_v40  ;;  %v789_v38 = vmul.f32 0.5, %v757_v26  ;;  %v599_v55 = vadd.f32 %v598_v35, %v1884_v37  ;;  %v662_v57 = vmax.f32 %v1976_v43, 0.0  ;;  %v647_v14 = vmax.f32 %v1984_v25, 0.0 }
 0x18f   : > { %v837_v49 = vmul.f32 %v805_v51, %v773_v28  ;;  %v680_v59 = vmul.f32 0.5, %v519_v8  ;;  %v1236_v61 = vpop.eup %1235  ;;  %v663_v34 = vmax.f32 %v1988_v31, 0.0  ;;  %v806_v35 = vsub.f32 %v1778_v62, %v646_v1 }
 0x190   : > { %v853_v32 = vmul.f32 %v821_v42, %v789_v38  ;;  %v696_v30 = vmul.f32 0.5, %v599_v55  ;;  %v1238_v29 = vpop.eup %1237  ;;  %v742_v63 = vadd.f32 1.0, %v1236_v61  ;;  %v822_v39 = vsub.f32 %v1784_v0, %v662_v57 }
 0x191   : > { %v869_v36 = vadd.f32 %v837_v49, %v645_v52  ;;  %1243 = vtanh.f32 %v680_v59  ;;  %v758_v19 = vadd.f32 1.0, %v1238_v29  ;;  %v2005_v43 = vpop.f32.mrb[20].mxu0  ;;  %v2007_v20 = vpop.f32.mrb[20].mxu1  ;;  %v525_v48 = vadd.f32 %v524_v7, %v1884_v37 }
 0x192   : > { %v885_v58 = vadd.f32 %v853_v32, %v661_v56  ;;  %1245 = vtanh.f32 %v696_v30  ;;  %v774_v54 = vmul.f32 0.5, %v742_v63  ;;  %v605_v52 = vadd.f32 %v604_v46, %v1884_v37  ;;  %v534_v53 = vpop.f32.mrb[21].mxu0  ;;  %v614_v40 = vpop.f32.mrb[21].mxu1 }
 0x193   : > { %901 = vst [vmem:[%s1650_s26 + $0x20] sm:$0xff] %v869_v36  ;;  %v790_v56 = vmul.f32 0.5, %v758_v19  ;;  %v807_v62 = vsub.f32 %v1791_v3, %v647_v14  ;;  %v823_v26 = vsub.f32 %v1799_v5, %v663_v34  ;;  %v529_v51 = vadd.f32 %v528_v41, %v1884_v37  ;;  %v2021_v0 = vpop.f32.mrb[22].mxu0  ;;  %v2023_v28 = vpop.f32.mrb[22].mxu1 }
 0x194   : > { %917 = vst [vmem:[%s1650_s26 + $0xa0] sm:$0xff] %v885_v58  ;;  %v838_v7 = vmul.f32 %v806_v35, %v774_v54  ;;  %v2027_v46 = vadd.f32 %v1954_v13, %v1888_v47  ;;  %v681_v8 = vmul.f32 0.5, %v525_v48  ;;  %v697_v42 = vmul.f32 0.5, %v605_v52  ;;  %v538_v38 = vpop.f32.mrb[23].mxu0  ;;  %v618_v3 = vpop.f32.mrb[23].mxu1 }
 0x195   : > { %v1240_v55 = vpop.eup %1239  ;;  %v854_v49 = vmul.f32 %v822_v39, %v790_v56  ;;  %v2031_v5 = vadd.f32 %v1956_v45, %v1888_v47  ;;  %v2035_v41 = vadd.f32 %v1978_v50, %v1888_v47  ;;  %v682_v59 = vmul.f32 0.5, %v529_v51 }
 0x196   : > { %v1242_v61 = vpop.eup %1241  ;;  %v870_v13 = vadd.f32 %v838_v7, %v646_v1  ;;  %v743_v32 = vadd.f32 1.0, %v1240_v55  ;;  %1247 = vtanh.f32 %v681_v8  ;;  %v609_v30 = vadd.f32 %v608_v60, %v1884_v37 }
 0x197   : > { %v886_v29 = vadd.f32 %v854_v49, %v662_v57  ;;  %v759_v36 = vadd.f32 1.0, %v1242_v61  ;;  %v2040_v63 = vadd.f32 %v1980_v44, %v1888_v47  ;;  %1249 = vtanh.f32 %v697_v42 }
 0x198   : > { %902 = vst [vmem:[%s1650_s26 + $0x28] sm:$0xff] %v870_v13  ;;  %v775_v45 = vmul.f32 0.5, %v743_v32  ;;  %v648_v50 = vmax.f32 %v2027_v46, 0.0  ;;  %1251 = vtanh.f32 %v682_v59  ;;  %v698_v58 = vmul.f32 0.5, %v609_v30 }
 0x199   : > { %918 = vst [vmem:[%s1650_s26 + $0xa8] sm:$0xff] %v886_v29  ;;  %v791_v35 = vmul.f32 0.5, %v759_v36  ;;  %v664_v1 = vmax.f32 %v2031_v5, 0.0  ;;  %v649_v19 = vmax.f32 %v2035_v41, 0.0  ;;  %v535_v60 = vadd.f32 %v534_v53, %v1884_v37  ;;  %v2048_v57 = vpop.f32.mrb[24].mxu0  ;;  %v2050_v39 = vpop.f32.mrb[24].mxu1 }
 0x19a   : > { %v839_v54 = vmul.f32 %v807_v62, %v775_v45  ;;  %v2054_v48 = vadd.f32 %v1990_v2, %v1888_v47  ;;  %1253 = vtanh.f32 %v698_v58  ;;  %v615_v52 = vadd.f32 %v614_v40, %v1884_v37  ;;  %v544_v56 = vpop.f32.mrb[25].mxu0  ;;  %v2057_v51 = vpop.f32.mrb[25].mxu1 }
 0x19b   : > { %v1244_v44 = vpop.eup %1243  ;;  %v855_v46 = vmul.f32 %v823_v26, %v791_v35  ;;  %v665_v8 = vmax.f32 %v2040_v63, 0.0  ;;  %v2062_v42 = vadd.f32 %v1992_v33, %v1888_v47  ;;  %v2064_v62 = vpop.f32.mrb[26].mxu0  ;;  %v683_v49 = vmul.f32 0.5, %v535_v60 }
 0x19c   : > { %v1246_v7 = vpop.eup %1245  ;;  %v744_v53 = vadd.f32 1.0, %v1244_v44  ;;  %v2066_v2 = vpop.f32.mrb[26].mxu1  ;;  %v871_v40 = vadd.f32 %v839_v54, %v647_v14  ;;  %v699_v5 = vmul.f32 0.5, %v615_v52  ;;  %v808_v33 = vsub.f32 %v1796_v4, %v648_v50 }
 0x19d   : > { %v760_v55 = vadd.f32 1.0, %v1246_v7  ;;  %v2070_v59 = vpop.f32.mrb[27].mxu0  ;;  %v2072_v26 = vpop.f32.mrb[27].mxu1  ;;  %v887_v61 = vadd.f32 %v855_v46, %v663_v34  ;;  %v824_v32 = vsub.f32 %v1802_v6, %v664_v1  ;;  %v650_v25 = vmax.f32 %v2054_v48, 0.0 }
 0x19e   : > { %v776_v13 = vmul.f32 0.5, %v744_v53  ;;  %903 = vst [vmem:[%s1650_s26 + $0x30] sm:$0xff] %v871_v40  ;;  %1255 = vtanh.f32 %v683_v49  ;;  %v539_v29 = vadd.f32 %v538_v38, %v1884_v37  ;;  %v619_v36 = vadd.f32 %v618_v3, %v1884_v37 }
 0x19f   : > { %v792_v30 = vmul.f32 0.5, %v760_v55  ;;  %919 = vst [vmem:[%s1650_s26 + $0xb0] sm:$0xff] %v887_v61  ;;  %1257 = vtanh.f32 %v699_v5  ;;  %v809_v4 = vsub.f32 %v1809_v9, %v649_v19  ;;  %v825_v6 = vsub.f32 %v1817_v11, %v665_v8 }
 0x1a0   : > { %v840_v14 = vmul.f32 %v808_v33, %v776_v13  ;;  %v1248_v45 = vpop.eup %1247  ;;  %v666_v34 = vmax.f32 %v2062_v42, 0.0  ;;  %v684_v44 = vmul.f32 0.5, %v539_v29  ;;  %v700_v38 = vmul.f32 0.5, %v619_v36 }
 0x1a1   : > { %v856_v31 = vmul.f32 %v824_v32, %v792_v30  ;;  %v1250_v58 = vpop.eup %1249  ;;  %v745_v60 = vadd.f32 1.0, %v1248_v45  ;;  %v2090_v54 = vpop.f32.mrb[28].mxu0  ;;  %v810_v7 = vsub.f32 %v1814_v10, %v650_v25  ;;  %v2097_v11 = vadd.f32 %v2005_v43, %v1888_v47 }
 0x1a2   : > { %v872_v35 = vadd.f32 %v840_v14, %v648_v50  ;;  %v2092_v3 = vpop.f32.mrb[28].mxu1  ;;  %v1252_v48 = vpop.eup %1251  ;;  %v761_v9 = vadd.f32 1.0, %v1250_v58  ;;  %v2104_v40 = vadd.f32 %v2007_v20, %v1888_v47  ;;  %1259 = vtanh.f32 %v684_v44 }
 0x1a3   : > { %v888_v52 = vadd.f32 %v856_v31, %v664_v1  ;;  %v554_v46 = vpop.f32.mrb[29].mxu0  ;;  %v2099_v53 = vpop.f32.mrb[29].mxu1  ;;  %v777_v50 = vmul.f32 0.5, %v745_v60  ;;  %v746_v42 = vadd.f32 1.0, %v1252_v48  ;;  %v826_v43 = vsub.f32 %v1820_v12, %v666_v34 }
 0x1a4   : > { %904 = vst [vmem:[%s1650_s26 + $0x38] sm:$0xff] %v872_v35  ;;  %v2106_v55 = vpop.f32.mrb[30].mxu0  ;;  %v2108_v1 = vpop.f32.mrb[30].mxu1  ;;  %v793_v49 = vmul.f32 0.5, %v761_v9  ;;  %1261 = vtanh.f32 %v700_v38  ;;  %v545_v5 = vadd.f32 %v544_v56, %v1884_v37  ;;  %v2119_v30 = vadd.f32 %v2021_v0, %v1888_v47 }
 0x1a5   : > { %v1254_v10 = vpop.eup %1253  ;;  %920 = vst [vmem:[%s1650_s26 + $0xb8] sm:$0xff] %v888_v52  ;;  %v2113_v61 = vpop.f32.mrb[31].mxu0  ;;  %v841_v13 = vmul.f32 %v809_v4, %v777_v50  ;;  %v778_v20 = vmul.f32 0.5, %v746_v42  ;;  %v651_v29 = vmax.f32 %v2097_v11, 0.0  ;;  %v625_v12 = vadd.f32 %v2057_v51, %v1884_v37 }
 0x1a6   : > { %v2115_v33 = vpop.f32.mrb[31].mxu1  ;;  %v762_v32 = vadd.f32 1.0, %v1254_v10  ;;  %v857_v14 = vmul.f32 %v825_v6, %v793_v49  ;;  %v685_v36 = vmul.f32 0.5, %v545_v5  ;;  %v667_v4 = vmax.f32 %v2104_v40, 0.0 }
 0x1a7   : > { %v873_v56 = vadd.f32 %v841_v13, %v649_v19  ;;  %v842_v45 = vmul.f32 %v810_v7, %v778_v20  ;;  %v617_v6 = vadd.f32 %v2023_v28, %v1888_v47  ;;  %v701_v35 = vmul.f32 0.5, %v625_v12 }
 0x1a8   : > { %v794_v31 = vmul.f32 0.5, %v762_v32  ;;  %v1256_v58 = vpop.eup %1255  ;;  %v889_v0 = vadd.f32 %v857_v14, %v665_v8  ;;  %1263 = vtanh.f32 %v685_v36  ;;  %v2134_v19 = vadd.f32 %v2048_v57, %v1888_v47 }
 0x1a9   : > { %v1258_v60 = vpop.eup %1257  ;;  %905 = vst [vmem:[%s1650_s26 + $0x40] sm:$0xff] %v873_v56  ;;  %v874_v51 = vadd.f32 %v842_v45, %v650_v25  ;;  %v747_v44 = vadd.f32 1.0, %v1256_v58  ;;  %v811_v63 = vsub.f32 %v1827_v15, %v651_v29  ;;  %1265 = vtanh.f32 %v701_v35 }
 0x1aa   : > { %v858_v41 = vmul.f32 %v826_v43, %v794_v31  ;;  %921 = vst [vmem:[%s1650_s26 + $0xc0] sm:$0xff] %v889_v0  ;;  %v763_v38 = vadd.f32 1.0, %v1258_v60  ;;  %v549_v28 = vadd.f32 %v2070_v59, %v1884_v37  ;;  %v827_v48 = vsub.f32 %v1835_v17, %v667_v4 }
 0x1ab   : > { %906 = vst [vmem:[%s1650_s26 + $0x48] sm:$0xff] %v874_v51  ;;  %v779_v25 = vmul.f32 0.5, %v747_v44  ;;  %v629_v52 = vadd.f32 %v2072_v26, %v1884_v37  ;;  %v652_v57 = vmax.f32 %v2119_v30, 0.0  ;;  %v668_v7 = vmax.f32 %v617_v6, 0.0 }
 0x1ac   : > { %v890_v8 = vadd.f32 %v858_v41, %v666_v34  ;;  %v795_v9 = vmul.f32 0.5, %v763_v38  ;;  %v686_v11 = vmul.f32 0.5, %v549_v28  ;;  %v1260_v50 = vpop.eup %1259  ;;  %v653_v42 = vmax.f32 %v2134_v19, 0.0 }
 0x1ad   : > { %v843_v15 = vmul.f32 %v811_v63, %v779_v25  ;;  %v702_v59 = vmul.f32 0.5, %v629_v52  ;;  %v555_v34 = vadd.f32 %v554_v46, %v1884_v37  ;;  %v748_v10 = vadd.f32 1.0, %v1260_v50 }
 0x1ae   : > { %922 = vst [vmem:[%s1650_s26 + $0xc8] sm:$0xff] %v890_v8  ;;  %v1262_v40 = vpop.eup %1261  ;;  %v859_v17 = vmul.f32 %v827_v48, %v795_v9  ;;  %1267 = vtanh.f32 %v686_v11  ;;  %v623_v43 = vadd.f32 %v2050_v39, %v1888_v47  ;;  %v812_v13 = vsub.f32 %v1832_v16, %v652_v57 }
 0x1af   : > { %v875_v26 = vadd.f32 %v843_v15, %v651_v29  ;;  %v764_v49 = vadd.f32 1.0, %v1262_v40  ;;  %1269 = vtanh.f32 %v702_v59  ;;  %v780_v20 = vmul.f32 0.5, %v748_v10 }
 0x1b0   : > { %v891_v5 = vadd.f32 %v859_v17, %v667_v4  ;;  %v687_v32 = vmul.f32 0.5, %v555_v34  ;;  %v828_v30 = vsub.f32 %v1838_v18, %v668_v7  ;;  %v813_v14 = vsub.f32 %v1845_v21, %v653_v42 }
 0x1b1   : > { %907 = vst [vmem:[%s1650_s26 + $0x50] sm:$0xff] %v875_v26  ;;  %v796_v46 = vmul.f32 0.5, %v764_v49  ;;  %v635_v36 = vadd.f32 %v2099_v53, %v1884_v37  ;;  %v844_v12 = vmul.f32 %v812_v13, %v780_v20  ;;  %v547_v39 = vadd.f32 %v2064_v62, %v1888_v47 }
 0x1b2   : > { %v1264_v29 = vpop.eup %1263  ;;  %923 = vst [vmem:[%s1650_s26 + $0xd0] sm:$0xff] %v891_v5  ;;  %1271 = vtanh.f32 %v687_v32  ;;  %v559_v16 = vadd.f32 %v2113_v61, %v1884_v37  ;;  %v669_v45 = vmax.f32 %v623_v43, 0.0  ;;  %v627_v53 = vadd.f32 %v2066_v2, %v1888_v47 }
 0x1b3   : > { %v860_v56 = vmul.f32 %v828_v30, %v796_v46  ;;  %v749_v18 = vadd.f32 1.0, %v1264_v29  ;;  %v703_v31 = vmul.f32 0.5, %v635_v36  ;;  %v1266_v21 = vpop.eup %1265  ;;  %v876_v4 = vadd.f32 %v844_v12, %v652_v57  ;;  %v2287_v29 = vld [vmem:[#allocation13_spill] sm:$0xff] }
 0x1b4   : > { %v688_v58 = vmul.f32 0.5, %v559_v16  ;;  %v639_v0 = vadd.f32 %v2115_v33, %v1884_v37  ;;  %v765_v35 = vadd.f32 1.0, %v1266_v21  ;;  %v654_v61 = vmax.f32 %v547_v39, 0.0 }
 0x1b5   : > { %v892_v62 = vadd.f32 %v860_v56, %v668_v7  ;;  %v781_v6 = vmul.f32 0.5, %v749_v18  ;;  %1273 = vtanh.f32 %v703_v31  ;;  %908 = vst [vmem:[%s1650_s26 + $0x58] sm:$0xff] %v876_v4  ;;  %v829_v51 = vsub.f32 %v1853_v23, %v669_v45 }
 0x1b6   : > { %1275 = vtanh.f32 %v688_v58  ;;  %v704_v60 = vmul.f32 0.5, %v639_v0  ;;  %v797_v44 = vmul.f32 0.5, %v765_v35  ;;  %v553_v2 = vadd.f32 %v2090_v54, %v1888_v47 }
 0x1b7   : > { %924 = vst [vmem:[%s1650_s26 + $0xd8] sm:$0xff] %v892_v62  ;;  %v845_v41 = vmul.f32 %v813_v14, %v781_v6  ;;  %v670_v63 = vmax.f32 %v627_v53, 0.0  ;;  %v814_v8 = vsub.f32 %v1850_v22, %v654_v61  ;;  %v633_v25 = vadd.f32 %v2092_v3, %v1888_v47 }
 0x1b8   : > { %v1268_v19 = vpop.eup %1267  ;;  %1277 = vtanh.f32 %v704_v60  ;;  %v861_v38 = vmul.f32 %v829_v51, %v797_v44  ;;  %v655_v9 = vmax.f32 %v553_v2, 0.0  ;;  %v557_v54 = vadd.f32 %v2106_v55, %v1888_v47 }
 0x1b9   : > { %v1270_v37 = vpop.eup %1269  ;;  %v877_v33 = vadd.f32 %v845_v41, %v653_v42  ;;  %v750_v28 = vadd.f32 1.0, %v1268_v19  ;;  %v830_v7 = vsub.f32 %v1856_v24, %v670_v63  ;;  %v637_v22 = vadd.f32 %v2108_v1, %v1888_v47  ;;  %v2285_v1 = vld [vmem:[#allocation12_spill] sm:$0xff] }
 0x1ba   : > { %v766_v48 = vadd.f32 1.0, %v1270_v37  ;;  %v893_v23 = vadd.f32 %v861_v38, %v669_v45  ;;  %v671_v42 = vmax.f32 %v633_v25, 0.0  ;;  %v815_v40 = vsub.f32 %v1863_v27, %v655_v9  ;;  %v2286_v27 = vld [vmem:[#allocation11_spill] sm:$0xff] }
 0x1bb   : > { %909 = vst [vmem:[%s1650_s26 + $0x60] sm:$0xff] %v877_v33  ;;  %v782_v52 = vmul.f32 0.5, %v750_v28  ;;  %v656_v55 = vmax.f32 %v557_v54, 0.0  ;;  %v672_v43 = vmax.f32 %v637_v22, 0.0 }
 0x1bc   : > { %v1272_v57 = vpop.eup %1271  ;;  %v798_v11 = vmul.f32 0.5, %v766_v48  ;;  %925 = vst [vmem:[%s1650_s26 + $0xe0] sm:$0xff] %v893_v23  ;;  %v831_v13 = vsub.f32 %v2285_v1, %v671_v42 }
 0x1bd   : > { %v846_v50 = vmul.f32 %v814_v8, %v782_v52  ;;  %v751_v15 = vadd.f32 1.0, %v1272_v57  ;;  %v816_v30 = vsub.f32 %v2286_v27, %v656_v55  ;;  %v832_v12 = vsub.f32 %v2287_v29, %v672_v43 }
 0x1be   : > { %v862_v3 = vmul.f32 %v830_v7, %v798_v11 }
 0x1bf   : > { %v1274_v59 = vpop.eup %1273  ;;  %v878_v34 = vadd.f32 %v846_v50, %v654_v61  ;;  %v783_v17 = vmul.f32 0.5, %v751_v15 }
 0x1c0   : > { %v1276_v10 = vpop.eup %1275  ;;  %v894_v24 = vadd.f32 %v862_v3, %v670_v63  ;;  %v767_v26 = vadd.f32 1.0, %v1274_v59 }
 0x1c1   : > { %910 = vst [vmem:[%s1650_s26 + $0x68] sm:$0xff] %v878_v34  ;;  %v847_v49 = vmul.f32 %v815_v40, %v783_v17  ;;  %v752_v5 = vadd.f32 1.0, %v1276_v10 }
 0x1c2   : > { %v1278_v47 = vpop.eup %1277  ;;  %926 = vst [vmem:[%s1650_s26 + $0xe8] sm:$0xff] %v894_v24  ;;  %v799_v20 = vmul.f32 0.5, %v767_v26 }
 0x1c3   : > { %v879_v32 = vadd.f32 %v847_v49, %v655_v9  ;;  %v784_v46 = vmul.f32 0.5, %v752_v5  ;;  %v768_v14 = vadd.f32 1.0, %v1278_v47 }
 0x1c4   : > { %v863_v36 = vmul.f32 %v831_v13, %v799_v20 }
 0x1c5   : > { %911 = vst [vmem:[%s1650_s26 + $0x70] sm:$0xff] %v879_v32  ;;  %v848_v39 = vmul.f32 %v816_v30, %v784_v46  ;;  %v800_v16 = vmul.f32 0.5, %v768_v14 }
 0x1c6   : > { %v895_v56 = vadd.f32 %v863_v36, %v671_v42 }
 0x1c7   : > { %v880_v45 = vadd.f32 %v848_v39, %v656_v55  ;;  %v864_v18 = vmul.f32 %v832_v12, %v800_v16 }
 0x1c8   : > { %927 = vst [vmem:[%s1650_s26 + $0xf0] sm:$0xff] %v895_v56 }
 0x1c9   : > { %912 = vst [vmem:[%s1650_s26 + $0x78] sm:$0xff] %v880_v45  ;;  %v896_v31 = vadd.f32 %v864_v18, %v672_v43 }
 0x1cb   : > { %928 = vst [vmem:[%s1650_s26 + $0xf8] sm:$0xff] %v896_v31 }
 0x1cc   : > { %1350 = shalt.err (!%p1347_p1)
}
 0x1cd   : > { %s1351_s26 = scalar_lea.hbm %s2193_s28, 4096  ;;  %s1355_s27 = scalar_lea.hbm %s2254_s3, 8192 }
 0x1ce   : > { %p1352_p2 = scmp.ne.s32.totalorder %s2193_s28, %s1351_s26  ;;  %p1356_p9 = scmp.lt.u32.totalorder %s2193_s28, %s2254_s3 }
 0x1cf   : > { %p1357_p0 = scmp.lt.u32.totalorder %s1355_s27, %s1351_s26  ;;  %p1359_p11 = scmp.lt.u32.totalorder %s1351_s26, %s2193_s28 }
 0x1d0   : > { %p1353_p4 = pnand %p1352_p2, %p1575_p8 }
 0x1d1   : > { %p1358_p6 = por %p1357_p0, %p1356_p9 }
 0x1d2   : > { %p1354_p5 = pneg %p1353_p4 }
 0x1d3   : > { %p1360_p10 = por %p1359_p11, %p1358_p6 }
 0x1d5   : > { %p1361_p12 = pnand %p1360_p10, %p1354_p5 }
 0x1d7   : > { %1364 = shalt.err (!%p1361_p12)
}
 0x1d8   : > { %s1447_s8 = smov 128   ;;  %s1448_s9 = smov 8  }
 0x1d9   : > { %1103 = dma.vmem_to_hbm [thread:$0]  (%p1575_p8), %s2195_s10, 4096, %s2193_s28, %s930_s5, %s1447_s8, %s1447_s8, %s1448_s9  }
 0x1da PF: > { %p1120_p13 = scmp.ge.s32.totalorder %s1439_s19, 2  ;;  %s958_s16 = sand.u32 1, %s1411_s12  }
 0x1db   : > { %p2288_p3 = scmp.ne.s32.totalorder %s2267_s25, 0  ;;  %s959_s6 = scalar_lea.sflag [#allocation4], %s958_s16 }
 0x1dd   : > { %p1114_p7 = pnand %p1120_p13, %p2288_p3 }
 0x1df   : > { %1406 = dma.done.wait (!%p1114_p7), %s959_s6, 4096  }
 0x1e0   : > { %1408 = vsyncadd (!%p1114_p7), %s959_s6, 4294963200  ;;  %s20_s19 = sadd.s32 1, %s1439_s19   ;;  %s2289_s12 = smov %s1415_s13 }
 0x1e1   : > { %p17_p1 = scmp.ge.s32.totalorder %s20_s19, 6   ;;  %s2290_s13 = smov %s1419_s14 }
 0x1e2   : > { %s2291_s14 = smov %s1592_s11  ;;  %s2292_s15 = smov %s1431_s17 }
 0x1e3   : > { %s2293_s16 = smov %s1435_s18  ;;  %s2294_s17 = smov %s2297_s30 }
 0x1e4   : > { %s2295_s18 = smov %s2301_s4  ;;  %19 = sbr.rel (!%p17_p1) target bundleno = 8 (0x8), region = 87 }
 0x1eb   :  { %964 = vsyncpa [#allocation3], 1 }
 0x1ec   :  { %966 = vsyncpa [#allocation3 + $0x1], 1 }
 0x1ed   :  { %967 = vsyncpa [#allocation6], 1 }
 0x1ee   :  { %968 = vsyncpa [#allocation4], 1 }
 0x1ef   :  { %970 = vsyncpa [#allocation4 + $0x1], 1 }

</bundles_post_ra>
